<compile_context>
chip_gen: v7x
topology: tpu7x:2x2x1
jax: 0.10.0
libtpu: 0.0.40
codegen_flags: <defaults>
</compile_context>

<pallas_src>
import jax
import jax.numpy as jnp
from jax.experimental import pallas as pl
from jax.experimental.pallas import tpu as pltpu

IN_DIM = 28 * 28      # 784 (ragged K: 6 full + 1 partial MXU pass)
HID = 512
OUT = 10
OUT_PAD = 128         # lane-dense output slab; wrapper slices [:, :10]
EPS = 1e-5
FUSED_MAX_ROWS = 512  # whole batch in one invocation below this (fits VMEM on all gens)
VMEM_LIMIT = 32 * 1024 * 1024


# ----------------------------------------------------------------------------
# Small-batch path: whole batch + all weights resident, single invocation.
# ----------------------------------------------------------------------------
def _fused_kernel(n_ref, x_ref,
                  w1_ref, b1_ref, g1_ref, be1_ref,
                  w2_ref, b2_ref, g2_ref, be2_ref,
                  w3_ref, b3_ref, o_ref):
    nv = n_ref[0]                                    # runtime valid-row count (SMEM)
    inv_n = 1.0 / nv.astype(jnp.float32)

    # ---- Linear(784->512) + ReLU : bf16 MXU inputs, f32 accumulation ----
    x = x_ref[...].astype(jnp.bfloat16)
    h = jnp.dot(x, w1_ref[...], preferred_element_type=jnp.float32) + b1_ref[...]
    h = jnp.maximum(h, 0.0)

    bp = h.shape[0]
    row = jax.lax.broadcasted_iota(jnp.int32, (bp, 1), 0)
    valid = row < nv                                 # padded rows excluded from stats

    def batchnorm(a, gamma, beta):
        am = jnp.where(valid, a, 0.0)
        mean = jnp.sum(am, axis=0, keepdims=True) * inv_n
        # one-pass biased variance (training-mode semantics), clamped >= 0
        var = jnp.maximum(
            jnp.sum(am * am, axis=0, keepdims=True) * inv_n - mean * mean, 0.0)
        return (a - mean) * jax.lax.rsqrt(var + EPS) * gamma + beta

    h = batchnorm(h, g1_ref[...], be1_ref[...])

    # ---- Linear(512->512) + ReLU + BatchNorm ----
    h = jnp.dot(h.astype(jnp.bfloat16), w2_ref[...],
                preferred_element_type=jnp.float32) + b2_ref[...]
    h = jnp.maximum(h, 0.0)
    h = batchnorm(h, g2_ref[...], be2_ref[...])

    # ---- Linear(512->10, lane-padded to 128) + Sigmoid ----
    logits = jnp.dot(h.astype(jnp.bfloat16), w3_ref[...],
                     preferred_element_type=jnp.float32) + b3_ref[...]
    o_ref[...] = 0.5 * (jnp.tanh(0.5 * logits) + 1.0)


def mlp_forward_fused(x, prepared):
    w1, b1, g1, be1, w2, b2, g2, be2, w3p, b3p = prepared
    B = x.shape[0]
    Bp = max(8, ((B + 7) // 8) * 8)                  # sublane-align the batch
    xp = jnp.pad(x, ((0, Bp - B), (0, 0))) if Bp != B else x
    n = jnp.array([B], jnp.int32)

    smem = pl.BlockSpec(memory_space=pltpu.MemorySpace.SMEM)
    vmem = pl.BlockSpec(memory_space=pltpu.MemorySpace.VMEM)
    out = pl.pallas_call(
        _fused_kernel,
        out_shape=jax.ShapeDtypeStruct((Bp, OUT_PAD), jnp.float32),
        in_specs=[smem] + [vmem] * 11,
        out_specs=vmem,
        compiler_params=pltpu.CompilerParams(vmem_limit_bytes=VMEM_LIMIT),
    )(n, xp, w1, b1, g1, be1, w2, b2, g2, be2, w3p, b3p)
    return out[:B, :OUT]


# ----------------------------------------------------------------------------
# Large-batch path: 1-D batch grid, weights VMEM-resident, pipelined M tiles.
# Whole-batch BN kept exact by accumulating sum / sum-of-squares across tiles
# in phase k and consuming the finalized stats in phase k+1.
# ----------------------------------------------------------------------------
def _phase1_kernel(n_ref, x_ref, w1_ref, b1_ref, h_ref, stats_ref):
    i = pl.program_id(0)

    @pl.when(i == 0)
    def _():
        stats_ref[...] = jnp.zeros_like(stats_ref)

    nv = n_ref[0]
    h = jnp.dot(x_ref[...].astype(jnp.bfloat16), w1_ref[...],
                preferred_element_type=jnp.float32) + b1_ref[...]
    h = jnp.maximum(h, 0.0)

    tm = h.shape[0]
    row = jax.lax.broadcasted_iota(jnp.int32, (tm, 1), 0) + i * tm
    hm = jnp.where(row < nv, h, 0.0)
    # TODO(synk): fold the two axis-0 (XLU) reductions into one MXU pass
    # (ones(1,tm) @ concat([hm, hm*hm])) if the XLU ever becomes the bottleneck.
    stats_ref[...] += jnp.concatenate(
        [jnp.sum(hm, axis=0, keepdims=True),
         jnp.sum(hm * hm, axis=0, keepdims=True)], axis=0)
    h_ref[...] = h


def _phase2_kernel(n_ref, h1_ref, s1_ref, g1_ref, be1_ref, w2_ref, b2_ref,
                   h2_ref, stats_ref):
    i = pl.program_id(0)

    @pl.when(i == 0)
    def _():
        stats_ref[...] = jnp.zeros_like(stats_ref)

    nv = n_ref[0]
    inv_n = 1.0 / nv.astype(jnp.float32)
    mean = s1_ref[0:1, :] * inv_n
    var = jnp.maximum(s1_ref[1:2, :] * inv_n - mean * mean, 0.0)

    h = (h1_ref[...] - mean) * jax.lax.rsqrt(var + EPS) * g1_ref[...] + be1_ref[...]
    h = jnp.dot(h.astype(jnp.bfloat16), w2_ref[...],
                preferred_element_type=jnp.float32) + b2_ref[...]
    h = jnp.maximum(h, 0.0)

    tm = h.shape[0]
    row = jax.lax.broadcasted_iota(jnp.int32, (tm, 1), 0) + i * tm
    hm = jnp.where(row < nv, h, 0.0)
    stats_ref[...] += jnp.concatenate(
        [jnp.sum(hm, axis=0, keepdims=True),
         jnp.sum(hm * hm, axis=0, keepdims=True)], axis=0)
    h2_ref[...] = h


def _phase3_kernel(n_ref, h2_ref, s2_ref, g2_ref, be2_ref, w3_ref, b3_ref, o_ref):
    nv = n_ref[0]
    inv_n = 1.0 / nv.astype(jnp.float32)
    mean = s2_ref[0:1, :] * inv_n
    var = jnp.maximum(s2_ref[1:2, :] * inv_n - mean * mean, 0.0)

    h = (h2_ref[...] - mean) * jax.lax.rsqrt(var + EPS) * g2_ref[...] + be2_ref[...]
    logits = jnp.dot(h.astype(jnp.bfloat16), w3_ref[...],
                     preferred_element_type=jnp.float32) + b3_ref[...]
    o_ref[...] = 0.5 * (jnp.tanh(0.5 * logits) + 1.0)


def mlp_forward_tiled(x, prepared, *, tile_batch=256):
    """Exact whole-batch BN for large B, pipelined over M tiles of `tile_batch`."""
    w1, b1, g1, be1, w2, b2, g2, be2, w3p, b3p = prepared
    B = x.shape[0]
    TM = tile_batch
    Bp = ((B + TM - 1) // TM) * TM
    nt = Bp // TM
    xp = jnp.pad(x, ((0, Bp - B), (0, 0))) if Bp != B else x
    n = jnp.array([B], jnp.int32)

    def tiled(shape):
        return pl.BlockSpec(shape, lambda i, nref: (i, 0))

    def resident(shape):                      # weights / stats: constant index_map
        return pl.BlockSpec(shape, lambda i, nref: (0, 0))

    cp_arb = pltpu.CompilerParams(dimension_semantics=("arbitrary",),
                                  vmem_limit_bytes=VMEM_LIMIT)
    cp_par = pltpu.CompilerParams(dimension_semantics=("parallel",),
                                  vmem_limit_bytes=VMEM_LIMIT)

    # Phase 1: h1_pre = relu(x @ w1 + b1); accumulate BN1 sum / sumsq.
    h1, s1 = pl.pallas_call(
        _phase1_kernel,
        out_shape=(jax.ShapeDtypeStruct((Bp, HID), jnp.float32),
                   jax.ShapeDtypeStruct((2, HID), jnp.float32)),
        grid_spec=pltpu.PrefetchScalarGridSpec(
            num_scalar_prefetch=1, grid=(nt,),
            in_specs=[tiled((TM, IN_DIM)), resident((IN_DIM, HID)),
                      resident((1, HID))],
            out_specs=(tiled((TM, HID)), resident((2, HID)))),
        compiler_params=cp_arb,
    )(n, xp, w1, b1)

    # Phase 2: BN1 -> Linear2 -> ReLU; accumulate BN2 sum / sumsq.
    h2, s2 = pl.pallas_call(
        _phase2_kernel,
        out_shape=(jax.ShapeDtypeStruct((Bp, HID), jnp.float32),
                   jax.ShapeDtypeStruct((2, HID), jnp.float32)),
        grid_spec=pltpu.PrefetchScalarGridSpec(
            num_scalar_prefetch=1, grid=(nt,),
            in_specs=[tiled((TM, HID)), resident((2, HID)),
                      resident((1, HID)), resident((1, HID)),
                      resident((HID, HID)), resident((1, HID))],
            out_specs=(tiled((TM, HID)), resident((2, HID)))),
        compiler_params=cp_arb,
    )(n, h1, s1, g1, be1, w2, b2)

    # Phase 3: BN2 -> Linear3 -> Sigmoid. Fully parallel over tiles (2 TCs on v7x).
    out = pl.pallas_call(
        _phase3_kernel,
        out_shape=jax.ShapeDtypeStruct((Bp, OUT_PAD), jnp.float32),
        grid_spec=pltpu.PrefetchScalarGridSpec(
            num_scalar_prefetch=1, grid=(nt,),
            in_specs=[tiled((TM, HID)), resident((2, HID)),
                      resident((1, HID)), resident((1, HID)),
                      resident((HID, OUT_PAD)), resident((1, OUT_PAD))],
            out_specs=tiled((TM, OUT_PAD))),
        compiler_params=cp_par,
    )(n, h2, s2, g2, be2, w3p, b3p)

    return out[:B, :OUT]


def mlp_forward(x, prepared, *, tile_batch=256):
    """x: (B, 784) f32. prepared: output of prepare_params. Returns (B, 10) f32."""
    if x.shape[0] <= FUSED_MAX_ROWS:
        return mlp_forward_fused(x, prepared)
    return mlp_forward_tiled(x, prepared, tile_batch=tile_batch)


# ----------------------------------------------------------------------------
# Parameter init / one-time weight preparation / references
# ----------------------------------------------------------------------------
def init_params(key):
    """Deterministic init mimicking torch.nn.Linear defaults
    (uniform in [-1/sqrt(fan_in), 1/sqrt(fan_in)]); BN gamma=1, beta=0."""
    ks = jax.random.split(key, 6)

    def linear(kw, kb, fan_in, fan_out):
        bound = 1.0 / jnp.sqrt(jnp.float32(fan_in))
        w = jax.random.uniform(kw, (fan_in, fan_out), jnp.float32, -bound, bound)
        b = jax.random.uniform(kb, (1, fan_out), jnp.float32, -bound, bound)
        return w, b

    w1, b1 = linear(ks[0], ks[1], IN_DIM, HID)
    w2, b2 = linear(ks[2], ks[3], HID, HID)
    w3, b3 = linear(ks[4], ks[5], HID, OUT)
    g1, be1 = jnp.ones((1, HID), jnp.float32), jnp.zeros((1, HID), jnp.float32)
    g2, be2 = jnp.ones((1, HID), jnp.float32), jnp.zeros((1, HID), jnp.float32)
    return (w1, b1, g1, be1, w2, b2, g2, be2, w3, b3)


def prepare_params(params):
    """One-time weight prep, hoisted out of the per-call path:
    cast matmul operands to bf16 (native MXU input) and lane-pad the final
    layer to 128 so the kernel's output store is an unmasked lane-dense vst."""
    w1, b1, g1, be1, w2, b2, g2, be2, w3, b3 = params
    w1b = w1.astype(jnp.bfloat16)
    w2b = w2.astype(jnp.bfloat16)
    w3p = jnp.pad(w3, ((0, 0), (0, OUT_PAD - OUT))).astype(jnp.bfloat16)
    b3p = jnp.pad(b3, ((0, 0), (0, OUT_PAD - OUT)))          # bias stays f32
    return (w1b, b1, g1, be1, w2b, b2, g2, be2, w3p, b3p)


def _reference_bf16(x, params):
    """Emulates the kernel's numerics (bf16 matmul inputs, f32 accum/BN)."""
    w1, b1, g1, be1, w2, b2, g2, be2, w3, b3 = params

    def bn(h, g, be):
        m = h.mean(0, keepdims=True)
        v = jnp.maximum((h * h).mean(0, keepdims=True) - m * m, 0.0)
        return (h - m) * jax.lax.rsqrt(v + EPS) * g + be

    h = jnp.dot(x.astype(jnp.bfloat16), w1.astype(jnp.bfloat16),
                preferred_element_type=jnp.float32) + b1
    h = bn(jnp.maximum(h, 0.0), g1, be1)
    h = jnp.dot(h.astype(jnp.bfloat16), w2.astype(jnp.bfloat16),
                preferred_element_type=jnp.float32) + b2
    h = bn(jnp.maximum(h, 0.0), g2, be2)
    logits = jnp.dot(h.astype(jnp.bfloat16), w3.astype(jnp.bfloat16),
                     preferred_element_type=jnp.float32) + b3
    return 0.5 * (jnp.tanh(0.5 * logits) + 1.0)


def _reference_f32(x, params):
    """Full-precision PyTorch-semantics reference (training-mode BN)."""
    w1, b1, g1, be1, w2, b2, g2, be2, w3, b3 = params
    h = jnp.maximum(x @ w1 + b1, 0.0)
    m = h.mean(0, keepdims=True); v = ((h - m) ** 2).mean(0, keepdims=True)
    h = (h - m) / jnp.sqrt(v + EPS) * g1 + be1
    h = jnp.maximum(h @ w2 + b2, 0.0)
    m = h.mean(0, keepdims=True); v = ((h - m) ** 2).mean(0, keepdims=True)
    h = (h - m) / jnp.sqrt(v + EPS) * g2 + be2
    return jax.nn.sigmoid(h @ w3 + b3)


if __name__ == "__main__":
    key = jax.random.PRNGKey(0)
    k_x, k_p, k_x2 = jax.random.split(key, 3)

    params = init_params(k_p)
    prepared = prepare_params(params)          # weight prep hoisted: done once

    # ---- small batch -> fused single-invocation path ----
    B = 8
    x = jax.random.normal(k_x, (B, IN_DIM), jnp.float32)
    out = jax.block_until_ready(mlp_forward(x, prepared))
    assert out.shape == (B, OUT)
    assert jnp.allclose(out, _reference_bf16(x, params), atol=5e-3, rtol=5e-3), \
        "fused path: mismatch vs bf16-emulated JAX reference"
    assert jnp.allclose(out, _reference_f32(x, params), atol=3e-2, rtol=3e-2), \
        "fused path: mismatch vs f32 JAX reference"

    # ---- larger, non-tile-multiple batch -> tiled/pipelined path ----
    B2 = 300
    x2 = jax.random.normal(k_x2, (B2, IN_DIM), jnp.float32)
    out2 = jax.block_until_ready(mlp_forward_tiled(x2, prepared, tile_batch=128))
    assert out2.shape == (B2, OUT)
    assert jnp.allclose(out2, _reference_bf16(x2, params), atol=5e-3, rtol=5e-3), \
        "tiled path: mismatch vs bf16-emulated JAX reference"
    assert jnp.allclose(out2, _reference_f32(x2, params), atol=3e-2, rtol=3e-2), \
        "tiled path: mismatch vs f32 JAX reference"

    print("KERNEL_OK")
</pallas_src>

<mosaic_0001>
module attributes {stable_mosaic.version = 11 : i64} {
  func.func @_fused_kernel(%arg0: memref<1xi32, #tpu.memory_space<smem>>, %arg1: memref<8x784xf32, #tpu.memory_space<vmem>>, %arg2: memref<784x512xbf16, #tpu.memory_space<vmem>>, %arg3: memref<1x512xf32, #tpu.memory_space<vmem>>, %arg4: memref<1x512xf32, #tpu.memory_space<vmem>>, %arg5: memref<1x512xf32, #tpu.memory_space<vmem>>, %arg6: memref<512x512xbf16, #tpu.memory_space<vmem>>, %arg7: memref<1x512xf32, #tpu.memory_space<vmem>>, %arg8: memref<1x512xf32, #tpu.memory_space<vmem>>, %arg9: memref<1x512xf32, #tpu.memory_space<vmem>>, %arg10: memref<512x128xbf16, #tpu.memory_space<vmem>>, %arg11: memref<1x128xf32, #tpu.memory_space<vmem>>, %arg12: memref<8x128xf32, #tpu.memory_space<vmem>>) attributes {dimension_semantics = [], scalar_prefetch = 0 : i64, scratch_operands = 0 : i64, tpu.core_type = #tpu.core_type<tc>} {
    %c0 = arith.constant 0 : index
    %0 = memref.load %arg0[%c0] : memref<1xi32, #tpu.memory_space<smem>>
    %1 = arith.sitofp %0 : i32 to f32
    %cst = arith.constant 1.000000e+00 : f32
    %2 = arith.divf %cst, %1 : f32
    %c0_0 = arith.constant 0 : index
    %c0_1 = arith.constant 0 : index
    %3 = vector.load %arg1[%c0_0, %c0_1] : memref<8x784xf32, #tpu.memory_space<vmem>>, vector<8x784xf32>
    %4 = arith.truncf %3 : vector<8x784xf32> to vector<8x784xbf16>
    %c0_2 = arith.constant 0 : index
    %c0_3 = arith.constant 0 : index
    %5 = vector.load %arg2[%c0_2, %c0_3] : memref<784x512xbf16, #tpu.memory_space<vmem>>, vector<784x512xbf16>
    %cst_4 = arith.constant dense<0.000000e+00> : vector<8x512xf32>
    %6 = tpu.matmul %4, %5, %cst_4 {dimension_numbers = #tpu.dot_dimension_numbers<[1], [0], [0], [1], [0, 0, 1, 1], [], []>} : vector<8x784xbf16>, vector<784x512xbf16>, vector<8x512xf32> -> vector<8x512xf32>
    %c0_5 = arith.constant 0 : index
    %c0_6 = arith.constant 0 : index
    %7 = vector.load %arg3[%c0_5, %c0_6] : memref<1x512xf32, #tpu.memory_space<vmem>>, vector<1x512xf32>
    %8 = vector.broadcast %7 : vector<1x512xf32> to vector<8x512xf32>
    %9 = arith.addf %6, %8 : vector<8x512xf32>
    %cst_7 = arith.constant 0.000000e+00 : f32
    %10 = vector.broadcast %cst_7 : f32 to vector<8x512xf32>
    %11 = arith.maximumf %9, %10 : vector<8x512xf32>
    %12 = tpu.iota {dimensions = array<i32: 0>} : vector<8x1xi32>
    %13 = vector.broadcast %0 : i32 to vector<8x1xi32>
    %14 = arith.cmpi slt, %12, %13 : vector<8x1xi32>
    %c0_8 = arith.constant 0 : index
    %c0_9 = arith.constant 0 : index
    %15 = vector.load %arg4[%c0_8, %c0_9] : memref<1x512xf32, #tpu.memory_space<vmem>>, vector<1x512xf32>
    %c0_10 = arith.constant 0 : index
    %c0_11 = arith.constant 0 : index
    %16 = vector.load %arg5[%c0_10, %c0_11] : memref<1x512xf32, #tpu.memory_space<vmem>>, vector<1x512xf32>
    %cst_12 = arith.constant 0.000000e+00 : f32
    %17 = vector.shape_cast %14 : vector<8x1xi1> to vector<8x1xi1>
    %18 = vector.broadcast %17 : vector<8x1xi1> to vector<8x512xi1>
    %19 = vector.broadcast %cst_12 : f32 to vector<8x512xf32>
    %20 = arith.select %18, %11, %19 : vector<8x512xi1>, vector<8x512xf32>
    %cst_13 = arith.constant dense<0.000000e+00> : vector<512xf32>
    %21 = vector.multi_reduction <add>, %20, %cst_13 [0] : vector<8x512xf32> to vector<512xf32>
    %22 = vector.shape_cast %21 : vector<512xf32> to vector<1x512xf32>
    %23 = vector.broadcast %2 : f32 to vector<1x512xf32>
    %24 = arith.mulf %22, %23 : vector<1x512xf32>
    %25 = arith.mulf %20, %20 : vector<8x512xf32>
    %cst_14 = arith.constant dense<0.000000e+00> : vector<512xf32>
    %26 = vector.multi_reduction <add>, %25, %cst_14 [0] : vector<8x512xf32> to vector<512xf32>
    %27 = vector.shape_cast %26 : vector<512xf32> to vector<1x512xf32>
    %28 = vector.broadcast %2 : f32 to vector<1x512xf32>
    %29 = arith.mulf %27, %28 : vector<1x512xf32>
    %30 = arith.mulf %24, %24 : vector<1x512xf32>
    %31 = arith.subf %29, %30 : vector<1x512xf32>
    %cst_15 = arith.constant 0.000000e+00 : f32
    %32 = vector.broadcast %cst_15 : f32 to vector<1x512xf32>
    %33 = arith.maximumf %31, %32 : vector<1x512xf32>
    %34 = vector.broadcast %24 : vector<1x512xf32> to vector<8x512xf32>
    %35 = arith.subf %11, %34 : vector<8x512xf32>
    %cst_16 = arith.constant 9.99999974E-6 : f32
    %36 = vector.broadcast %cst_16 : f32 to vector<1x512xf32>
    %37 = arith.addf %33, %36 : vector<1x512xf32>
    %38 = math.rsqrt %37 : vector<1x512xf32>
    %39 = vector.broadcast %38 : vector<1x512xf32> to vector<8x512xf32>
    %40 = arith.mulf %35, %39 : vector<8x512xf32>
    %41 = vector.broadcast %15 : vector<1x512xf32> to vector<8x512xf32>
    %42 = arith.mulf %40, %41 : vector<8x512xf32>
    %43 = vector.broadcast %16 : vector<1x512xf32> to vector<8x512xf32>
    %44 = arith.addf %42, %43 : vector<8x512xf32>
    %45 = arith.truncf %44 : vector<8x512xf32> to vector<8x512xbf16>
    %c0_17 = arith.constant 0 : index
    %c0_18 = arith.constant 0 : index
    %46 = vector.load %arg6[%c0_17, %c0_18] : memref<512x512xbf16, #tpu.memory_space<vmem>>, vector<512x512xbf16>
    %cst_19 = arith.constant dense<0.000000e+00> : vector<8x512xf32>
    %47 = tpu.matmul %45, %46, %cst_19 {dimension_numbers = #tpu.dot_dimension_numbers<[1], [0], [0], [1], [0, 0, 1, 1], [], []>} : vector<8x512xbf16>, vector<512x512xbf16>, vector<8x512xf32> -> vector<8x512xf32>
    %c0_20 = arith.constant 0 : index
    %c0_21 = arith.constant 0 : index
    %48 = vector.load %arg7[%c0_20, %c0_21] : memref<1x512xf32, #tpu.memory_space<vmem>>, vector<1x512xf32>
    %49 = vector.broadcast %48 : vector<1x512xf32> to vector<8x512xf32>
    %50 = arith.addf %47, %49 : vector<8x512xf32>
    %cst_22 = arith.constant 0.000000e+00 : f32
    %51 = vector.broadcast %cst_22 : f32 to vector<8x512xf32>
    %52 = arith.maximumf %50, %51 : vector<8x512xf32>
    %c0_23 = arith.constant 0 : index
    %c0_24 = arith.constant 0 : index
    %53 = vector.load %arg8[%c0_23, %c0_24] : memref<1x512xf32, #tpu.memory_space<vmem>>, vector<1x512xf32>
    %c0_25 = arith.constant 0 : index
    %c0_26 = arith.constant 0 : index
    %54 = vector.load %arg9[%c0_25, %c0_26] : memref<1x512xf32, #tpu.memory_space<vmem>>, vector<1x512xf32>
    %cst_27 = arith.constant 0.000000e+00 : f32
    %55 = vector.shape_cast %14 : vector<8x1xi1> to vector<8x1xi1>
    %56 = vector.broadcast %55 : vector<8x1xi1> to vector<8x512xi1>
    %57 = vector.broadcast %cst_27 : f32 to vector<8x512xf32>
    %58 = arith.select %56, %52, %57 : vector<8x512xi1>, vector<8x512xf32>
    %cst_28 = arith.constant dense<0.000000e+00> : vector<512xf32>
    %59 = vector.multi_reduction <add>, %58, %cst_28 [0] : vector<8x512xf32> to vector<512xf32>
    %60 = vector.shape_cast %59 : vector<512xf32> to vector<1x512xf32>
    %61 = vector.broadcast %2 : f32 to vector<1x512xf32>
    %62 = arith.mulf %60, %61 : vector<1x512xf32>
    %63 = arith.mulf %58, %58 : vector<8x512xf32>
    %cst_29 = arith.constant dense<0.000000e+00> : vector<512xf32>
    %64 = vector.multi_reduction <add>, %63, %cst_29 [0] : vector<8x512xf32> to vector<512xf32>
    %65 = vector.shape_cast %64 : vector<512xf32> to vector<1x512xf32>
    %66 = vector.broadcast %2 : f32 to vector<1x512xf32>
    %67 = arith.mulf %65, %66 : vector<1x512xf32>
    %68 = arith.mulf %62, %62 : vector<1x512xf32>
    %69 = arith.subf %67, %68 : vector<1x512xf32>
    %cst_30 = arith.constant 0.000000e+00 : f32
    %70 = vector.broadcast %cst_30 : f32 to vector<1x512xf32>
    %71 = arith.maximumf %69, %70 : vector<1x512xf32>
    %72 = vector.broadcast %62 : vector<1x512xf32> to vector<8x512xf32>
    %73 = arith.subf %52, %72 : vector<8x512xf32>
    %cst_31 = arith.constant 9.99999974E-6 : f32
    %74 = vector.broadcast %cst_31 : f32 to vector<1x512xf32>
    %75 = arith.addf %71, %74 : vector<1x512xf32>
    %76 = math.rsqrt %75 : vector<1x512xf32>
    %77 = vector.broadcast %76 : vector<1x512xf32> to vector<8x512xf32>
    %78 = arith.mulf %73, %77 : vector<8x512xf32>
    %79 = vector.broadcast %53 : vector<1x512xf32> to vector<8x512xf32>
    %80 = arith.mulf %78, %79 : vector<8x512xf32>
    %81 = vector.broadcast %54 : vector<1x512xf32> to vector<8x512xf32>
    %82 = arith.addf %80, %81 : vector<8x512xf32>
    %83 = arith.truncf %82 : vector<8x512xf32> to vector<8x512xbf16>
    %c0_32 = arith.constant 0 : index
    %c0_33 = arith.constant 0 : index
    %84 = vector.load %arg10[%c0_32, %c0_33] : memref<512x128xbf16, #tpu.memory_space<vmem>>, vector<512x128xbf16>
    %cst_34 = arith.constant dense<0.000000e+00> : vector<8x128xf32>
    %85 = tpu.matmul %83, %84, %cst_34 {dimension_numbers = #tpu.dot_dimension_numbers<[1], [0], [0], [1], [0, 0, 1, 1], [], []>} : vector<8x512xbf16>, vector<512x128xbf16>, vector<8x128xf32> -> vector<8x128xf32>
    %c0_35 = arith.constant 0 : index
    %c0_36 = arith.constant 0 : index
    %86 = vector.load %arg11[%c0_35, %c0_36] : memref<1x128xf32, #tpu.memory_space<vmem>>, vector<1x128xf32>
    %87 = vector.broadcast %86 : vector<1x128xf32> to vector<8x128xf32>
    %88 = arith.addf %85, %87 : vector<8x128xf32>
    %cst_37 = arith.constant 5.000000e-01 : f32
    %89 = vector.broadcast %cst_37 : f32 to vector<8x128xf32>
    %90 = arith.mulf %89, %88 : vector<8x128xf32>
    %91 = math.tanh %90 : vector<8x128xf32>
    %cst_38 = arith.constant 1.000000e+00 : f32
    %92 = vector.broadcast %cst_38 : f32 to vector<8x128xf32>
    %93 = arith.addf %91, %92 : vector<8x128xf32>
    %cst_39 = arith.constant 5.000000e-01 : f32
    %94 = vector.broadcast %cst_39 : f32 to vector<8x128xf32>
    %95 = arith.mulf %94, %93 : vector<8x128xf32>
    %c0_40 = arith.constant 0 : index
    %c0_41 = arith.constant 0 : index
    %96 = vector.load %arg12[%c0_40, %c0_41] : memref<8x128xf32, #tpu.memory_space<vmem>>, vector<8x128xf32>
    tpu.vector_store %arg12[%c0_40, %c0_41], %95 {strides = array<i32>} : memref<8x128xf32, #tpu.memory_space<vmem>>, vector<8x128xf32>,
    return
  }
}

</mosaic_0001>

<bundles_post_ra>
// kernel: tpu_custom_call.1
= control target key start
LH: loop header
LB: loop body
LE: loop exit
PB: predicated region body
PF: predicated region fallthrough
CT: control target
= control target key end

     0   :  { %18 = vsyncpa [#allocation4], 0  ;;  %s4685_s0 = inlined_call_operand.<no memory space> [shape: s32[1], index: 0, kind: input, shape index: {}]   ;;  %s4686_s1 = inlined_call_operand.hbm [shape: f32[8,784], index: 1, kind: input, shape index: {}]   ;;  %s4687_s2 = inlined_call_operand.hbm [shape: bf16[784,512], index: 2, kind: input, shape index: {}]   ;;  %s4688_s3 = inlined_call_operand.vmem [shape: f32[1,512], index: 3, kind: input, shape index: {}]   ;;  %s4689_s4 = inlined_call_operand.vmem [shape: f32[1,512], index: 4, kind: input, shape index: {}]   ;;  %s4690_s5 = inlined_call_operand.vmem [shape: f32[1,512], index: 5, kind: input, shape index: {}]   ;;  %s4691_s6 = inlined_call_operand.hbm [shape: bf16[512,512], index: 6, kind: input, shape index: {}]   ;;  %s4692_s7 = inlined_call_operand.vmem [shape: f32[1,512], index: 7, kind: input, shape index: {}]   ;;  %s4693_s8 = inlined_call_operand.vmem [shape: f32[1,512], index: 8, kind: input, shape index: {}]   ;;  %s4694_s9 = inlined_call_operand.vmem [shape: f32[1,512], index: 9, kind: input, shape index: {}]   ;;  %s4695_s10 = inlined_call_operand.hbm [shape: bf16[512,128], index: 10, kind: input, shape index: {}]   ;;  %s4696_s11 = inlined_call_operand.vmem [shape: f32[1,128], index: 11, kind: input, shape index: {}]   ;;  %s4697_s12 = inlined_call_operand.hbm [shape: f32[8,128], index: 12, kind: output, shape index: {}]  }
   0x1   :  { %19 = vsyncpa [#allocation7], 0 }
   0x2   :  { %20 = vsyncpa [#allocation10], 0 }
   0x3   :  { %21 = vsyncpa [#allocation5], 0  ;;  %s4387_s21 = smov [#allocation6]   ;;  %s4269_s25 = scalar_lea.hbm %s4687_s2, 25088 }
   0x4   :  { %s39_s22 = sshll.u32 %s4387_s21, 4  ;;  %p4270_p0 = scmp.ne.s32.totalorder %s4687_s2, %s4269_s25  ;;  %s40_s22 = int_to_ptr.vmem [resolvable:$true] %s39_s22 }
   0x5   :  { %p4273_p1 = scmp.lt.u32.totalorder %s4269_s25, %s4687_s2 }
   0x7   :  { %p4275_p2 = pnand %p4273_p1, %p4270_p0 }
   0x9   :  { %4278 = shalt.err (!%p4275_p2)
}
   0xa   :  { %s4279_s30 = scalar_lea.vmem %s40_s22, 25088  ;;  %p4284_p4 = scmp.lt.s32.totalorder %s40_s22, %s40_s22 }
   0xb   :  { %p4280_p3 = scmp.ne.s32.totalorder %s40_s22, %s4279_s30  ;;  %p4285_p5 = scmp.lt.s32.totalorder %s4279_s30, %s4279_s30 }
   0xd   :  { %p4286_p6 = por %p4285_p5, %p4284_p4 }
   0xf   :  { %p4287_p7 = pnand %p4286_p6, %p4280_p3 }
  0x11   :  { %4290 = shalt.err (!%p4287_p7)
}
  0x12   :  { %s4388_s13 = smov 256   ;;  %s4389_s14 = smov 16  }
  0x13   :  { %45 = dma.hbm_to_vmem [thread:$0]  %s4687_s2, 25088, %s40_s22, [#allocation7], %s4388_s13, %s4388_s13, %s4389_s14  }
  0x14   :  { %s4390_s17 = smov [#allocation3]   ;;  %s4391_s19 = smov [#allocation8]  }
  0x15   :  { %s30_s18 = sshll.u32 %s4390_s17, 4  ;;  %s57_s20 = sshll.u32 %s4391_s19, 4  ;;  %s31_s18 = int_to_ptr.vmem [resolvable:$true] %s30_s18  ;;  %s58_s20 = int_to_ptr.vmem [resolvable:$true] %s57_s20 }
  0x16   :  { %s4291_s24 = scalar_lea.hbm %s4686_s1, 896 }
  0x17   :  { %p4292_p8 = scmp.ne.s32.totalorder %s4686_s1, %s4291_s24  ;;  %p4295_p9 = scmp.lt.u32.totalorder %s4291_s24, %s4686_s1 }
  0x19   :  { %p4297_p10 = pnand %p4295_p9, %p4292_p8 }
  0x1b   :  { %4300 = shalt.err (!%p4297_p10)
}
  0x1c   :  { %s4301_s2 = scalar_lea.vmem %s31_s18, 896  ;;  %p4306_p12 = scmp.lt.s32.totalorder %s31_s18, %s31_s18 }
  0x1d   :  { %p4302_p11 = scmp.ne.s32.totalorder %s31_s18, %s4301_s2  ;;  %p4307_p13 = scmp.lt.s32.totalorder %s4301_s2, %s4301_s2 }
  0x1f   :  { %p4308_p0 = por %p4307_p13, %p4306_p12 }
  0x21   :  { %p4309_p1 = pnand %p4308_p0, %p4302_p11 }
  0x23   :  { %4312 = shalt.err (!%p4309_p1)
}
  0x24   :  { %33 = dma.hbm_to_vmem [thread:$0]  %s4686_s1, 896, %s31_s18, [#allocation4]  }
  0x25   :  { %s4313_s16 = scalar_lea.hbm %s4691_s6, 16384 }
  0x26   :  { %p4314_p2 = scmp.ne.s32.totalorder %s4691_s6, %s4313_s16  ;;  %p4317_p3 = scmp.lt.u32.totalorder %s4313_s16, %s4691_s6 }
  0x28   :  { %p4319_p4 = pnand %p4317_p3, %p4314_p2 }
  0x2a   :  { %4322 = shalt.err (!%p4319_p4)
}
  0x2b   :  { %s4323_s24 = scalar_lea.vmem %s58_s20, 16384  ;;  %p4328_p6 = scmp.lt.s32.totalorder %s58_s20, %s58_s20 }
  0x2c   :  { %p4324_p5 = scmp.ne.s32.totalorder %s58_s20, %s4323_s24  ;;  %p4329_p7 = scmp.lt.s32.totalorder %s4323_s24, %s4323_s24 }
  0x2e   :  { %p4330_p8 = por %p4329_p7, %p4328_p6 }
  0x30   :  { %p4331_p9 = pnand %p4330_p8, %p4324_p5 }
  0x32   :  { %4334 = shalt.err (!%p4331_p9)
}
  0x33   :  { %63 = dma.hbm_to_vmem [thread:$0]  %s4691_s6, 16384, %s58_s20, [#allocation7], %s4388_s13, %s4388_s13, %s4389_s14  }
  0x34   :  { %s4392_s25 = smov [#allocation9]   ;;  %s4335_s2 = scalar_lea.hbm %s4695_s10, 4096 }
  0x35   :  { %s75_s26 = sshll.u32 %s4392_s25, 4  ;;  %p4336_p10 = scmp.ne.s32.totalorder %s4695_s10, %s4335_s2  ;;  %s76_s26 = int_to_ptr.vmem [resolvable:$true] %s75_s26 }
  0x36   :  { %p4339_p11 = scmp.lt.u32.totalorder %s4335_s2, %s4695_s10 }
  0x38   :  { %p4341_p12 = pnand %p4339_p11, %p4336_p10 }
  0x3a   :  { %4344 = shalt.err (!%p4341_p12)
}
  0x3b   :  { %s4345_s16 = scalar_lea.vmem %s76_s26, 4096  ;;  %p4350_p0 = scmp.lt.s32.totalorder %s76_s26, %s76_s26 }
  0x3c   :  { %p4346_p13 = scmp.ne.s32.totalorder %s76_s26, %s4345_s16  ;;  %p4351_p1 = scmp.lt.s32.totalorder %s4345_s16, %s4345_s16 }
  0x3e   :  { %p4352_p2 = por %p4351_p1, %p4350_p0 }
  0x40   :  { %p4353_p3 = pnand %p4352_p2, %p4346_p13 }
  0x42   :  { %4356 = shalt.err (!%p4353_p3)
}
  0x43   :  { %s4393_s6 = smov 64   ;;  %s4394_s13 = smov 4  }
  0x44   :  { %81 = dma.hbm_to_vmem [thread:$0]  %s4695_s10, 4096, %s76_s26, [#allocation10], %s4393_s6, %s4393_s6, %s4394_s13  }
  0x45   :  { %4379 = dma.done.wait [#allocation4], 896  }
  0x46   :  { %4380 = vsyncadd [#allocation4], 4294966400 }
  0x47   :  { %4381 = dma.done.wait [#allocation7], 41472  }
  0x48   :  { %4382 = vsyncadd [#allocation7], 4294925824 }
  0x49   :  { %4383 = dma.done.wait [#allocation10], 4096  }
  0x4a   :  { %4384 = vsyncadd [#allocation10], 4294963200  ;;  %v3731_v0 = vld [vmem:[#allocation6 + $0x4] ss:$16 sps:$4 sm:$0xff]   ;;  %v3733_v1 = vld [vmem:[#allocation6 + $0xc] ss:$16 sps:$4 sm:$0xff]   ;;  %s98_s19 = scvt.s32.f32 %s4685_s0 }
  0x4b   :  { %1318 = vmatprep.subr.bf16.mxu0 %v3731_v0  ;;  %v3735_v2 = vld [vmem:[#allocation6] ss:$16 sps:$4 sm:$0xff]   ;;  %v3736_v3 = vld [vmem:[#allocation6 + $0x8] ss:$16 sps:$4 sm:$0xff]   ;;  %1482 = vmatprep.subr.bf16.mxu1 %v3733_v1  ;;  %v3737_v4 = vld [vmem:[#allocation6 + $0x24] ss:$16 sps:$4 sm:$0xff]  }
  0x4c   :  { %1319 = vmatpush1.bf16.msra.mxu0 %v3735_v2  ;;  %1483 = vmatpush1.bf16.msra.mxu1 %v3736_v3  ;;  %v3739_v5 = vld [vmem:[#allocation6 + $0x2c] ss:$16 sps:$4 sm:$0xff]   ;;  %v3741_v6 = vld [vmem:[#allocation6 + $0x20] ss:$16 sps:$4 sm:$0xff]   ;;  %v3742_v7 = vld [vmem:[#allocation6 + $0x28] ss:$16 sps:$4 sm:$0xff]  }
  0x4d   :  { %1320 = vmatprep.subr.bf16.mxu0 %v3737_v4  ;;  %1484 = vmatprep.subr.bf16.mxu1 %v3739_v5  ;;  %v3743_v8 = vld [vmem:[#allocation6 + $0x44] ss:$16 sps:$4 sm:$0xff]   ;;  %v3745_v9 = vld [vmem:[#allocation6 + $0x4c] ss:$16 sps:$4 sm:$0xff]   ;;  %v3747_v10 = vld [vmem:[#allocation6 + $0x40] ss:$16 sps:$4 sm:$0xff]  }
  0x4e   :  { %v3748_v11 = vld [vmem:[#allocation6 + $0x48] ss:$16 sps:$4 sm:$0xff]   ;;  %v3749_v12 = vld [vmem:[#allocation6 + $0x64] ss:$16 sps:$4 sm:$0xff]   ;;  %v3751_v13 = vld [vmem:[#allocation6 + $0x6c] ss:$16 sps:$4 sm:$0xff]  }
  0x4f   :  { %v3753_v14 = vld [vmem:[#allocation6 + $0x60] ss:$16 sps:$4 sm:$0xff]   ;;  %v3754_v15 = vld [vmem:[#allocation6 + $0x68] ss:$16 sps:$4 sm:$0xff]   ;;  %v3755_v16 = vld [vmem:[#allocation6 + $0x84] ss:$16 sps:$4 sm:$0xff]  }
  0x50   :  { %1321 = vmatpush1.bf16.msra.mxu0 %v3741_v6  ;;  %1485 = vmatpush1.bf16.msra.mxu1 %v3742_v7  ;;  %v3757_v17 = vld [vmem:[#allocation6 + $0x8c] ss:$16 sps:$4 sm:$0xff]   ;;  %v3759_v18 = vld [vmem:[#allocation6 + $0x80] ss:$16 sps:$4 sm:$0xff]   ;;  %v3760_v19 = vld [vmem:[#allocation6 + $0x88] ss:$16 sps:$4 sm:$0xff]  }
  0x51   :  { %1322 = vmatprep.subr.bf16.mxu0 %v3743_v8  ;;  %1486 = vmatprep.subr.bf16.mxu1 %v3745_v9  ;;  %v3761_v20 = vld [vmem:[#allocation6 + $0xa4] ss:$16 sps:$4 sm:$0xff]   ;;  %v3763_v21 = vld [vmem:[#allocation6 + $0xac] ss:$16 sps:$4 sm:$0xff]   ;;  %v3765_v22 = vld [vmem:[#allocation6 + $0xa0] ss:$16 sps:$4 sm:$0xff]  }
  0x52   :  { %v3766_v23 = vld [vmem:[#allocation6 + $0xa8] ss:$16 sps:$4 sm:$0xff]   ;;  %v3767_v24 = vld [vmem:[#allocation6 + $0xc4] ss:$16 sps:$4 sm:$0xff]   ;;  %v3769_v25 = vld [vmem:[#allocation6 + $0xcc] ss:$16 sps:$4 sm:$0xff]  }
  0x53   :  { %v3771_v26 = vld [vmem:[#allocation6 + $0xc0] ss:$16 sps:$4 sm:$0xff]   ;;  %v3772_v27 = vld [vmem:[#allocation6 + $0xc8] ss:$16 sps:$4 sm:$0xff]   ;;  %v3773_v28 = vld [vmem:[#allocation6 + $0xe4] ss:$16 sps:$4 sm:$0xff]  }
  0x54   :  { %1323 = vmatpush1.bf16.msra.mxu0 %v3747_v10  ;;  %1487 = vmatpush1.bf16.msra.mxu1 %v3748_v11  ;;  %v3775_v29 = vld [vmem:[#allocation6 + $0xec] ss:$16 sps:$4 sm:$0xff]   ;;  %v3777_v30 = vld [vmem:[#allocation6 + $0xe0] ss:$16 sps:$4 sm:$0xff]   ;;  %v3778_v31 = vld [vmem:[#allocation6 + $0xe8] ss:$16 sps:$4 sm:$0xff]  }
  0x55   :  { %1324 = vmatprep.subr.bf16.mxu0 %v3749_v12  ;;  %1488 = vmatprep.subr.bf16.mxu1 %v3751_v13  ;;  %v3779_v32 = vld [vmem:[#allocation6 + $0x104] ss:$16 sps:$4 sm:$0xff]   ;;  %v3781_v33 = vld [vmem:[#allocation6 + $0x10c] ss:$16 sps:$4 sm:$0xff]   ;;  %v3783_v34 = vld [vmem:[#allocation6 + $0x100] ss:$16 sps:$4 sm:$0xff]  }
  0x56   :  { %v3784_v35 = vld [vmem:[#allocation6 + $0x108] ss:$16 sps:$4 sm:$0xff]   ;;  %v3785_v36 = vld [vmem:[#allocation6 + $0x124] ss:$16 sps:$4 sm:$0xff]   ;;  %v3787_v37 = vld [vmem:[#allocation6 + $0x12c] ss:$16 sps:$4 sm:$0xff]  }
  0x57   :  { %v3789_v38 = vld [vmem:[#allocation6 + $0x120] ss:$16 sps:$4 sm:$0xff]   ;;  %v3790_v39 = vld [vmem:[#allocation6 + $0x128] ss:$16 sps:$4 sm:$0xff]   ;;  %v3791_v40 = vld [vmem:[#allocation6 + $0x144] ss:$16 sps:$4 sm:$0xff]  }
  0x58   :  { %1325 = vmatpush1.bf16.msra.mxu0 %v3753_v14  ;;  %1489 = vmatpush1.bf16.msra.mxu1 %v3754_v15  ;;  %v3793_v41 = vld [vmem:[#allocation6 + $0x14c] ss:$16 sps:$4 sm:$0xff]   ;;  %v3795_v42 = vld [vmem:[#allocation6 + $0x140] ss:$16 sps:$4 sm:$0xff]   ;;  %v3796_v43 = vld [vmem:[#allocation6 + $0x148] ss:$16 sps:$4 sm:$0xff]  }
  0x59   :  { %1326 = vmatprep.subr.bf16.mxu0 %v3755_v16  ;;  %1490 = vmatprep.subr.bf16.mxu1 %v3757_v17  ;;  %v3797_v44 = vld [vmem:[#allocation6 + $0x164] ss:$16 sps:$4 sm:$0xff]   ;;  %v3799_v45 = vld [vmem:[#allocation6 + $0x16c] ss:$16 sps:$4 sm:$0xff]   ;;  %v3801_v47 = vld [vmem:[#allocation6 + $0x160] ss:$16 sps:$4 sm:$0xff]  }
  0x5a   :  { %v103_v46 = vld [vmem:[#allocation3 + $0x8] sm:$0xff]  ;;  %v3802_v49 = vld [vmem:[#allocation6 + $0x168] ss:$16 sps:$4 sm:$0xff]   ;;  %v3805_v51 = vld [vmem:[#allocation6 + $0x18c] ss:$16 sps:$4 sm:$0xff]   ;;  %vm1314_vm0 = vcmask 130048  }
  0x5b   :  { %v110_v48 = vpack.c.bf16 %v103_v46, %v103_v46  ;;  %v3803_v50 = vld [vmem:[#allocation6 + $0x184] ss:$16 sps:$4 sm:$0xff]   ;;  %v3807_v52 = vld [vmem:[#allocation6 + $0x180] ss:$16 sps:$4 sm:$0xff]   ;;  %v3808_v53 = vld [vmem:[#allocation6 + $0x188] ss:$16 sps:$4 sm:$0xff]  }
  0x5c   :  { %1327 = vmatpush1.bf16.msra.mxu0 %v3759_v18  ;;  %1491 = vmatpush1.bf16.msra.mxu1 %v3760_v19  ;;  %v3809_v54 = vld [vmem:[#allocation6 + $0x1a4] ss:$16 sps:$4 sm:$0xff]   ;;  %v3811_v55 = vld [vmem:[#allocation6 + $0x1ac] ss:$16 sps:$4 sm:$0xff]   ;;  %v3813_v56 = vld [vmem:[#allocation6 + $0x1a0] ss:$16 sps:$4 sm:$0xff]  }
  0x5d   :  { %1328 = vmatprep.subr.bf16.mxu0 %v3761_v20  ;;  %1492 = vmatprep.subr.bf16.mxu1 %v3763_v21  ;;  %v3814_v57 = vld [vmem:[#allocation6 + $0x1a8] ss:$16 sps:$4 sm:$0xff]   ;;  %v3815_v58 = vld [vmem:[#allocation6 + $0x1c4] ss:$16 sps:$4 sm:$0xff]   ;;  %v3817_v59 = vld [vmem:[#allocation6 + $0x1cc] ss:$16 sps:$4 sm:$0xff]  }
  0x5e   :  { %1350 = vmatprep.mubr.bf16.mxu0 %v110_v48  ;;  %1514 = vmatprep.mubr.bf16.mxu1 %v110_v48  ;;  %v3819_v60 = vld [vmem:[#allocation6 + $0x1c0] ss:$16 sps:$4 sm:$0xff]   ;;  %v3820_v61 = vld [vmem:[#allocation6 + $0x1c8] ss:$16 sps:$4 sm:$0xff]   ;;  %v3821_v62 = vld [vmem:[#allocation6 + $0x1e4] ss:$16 sps:$4 sm:$0xff]  }
  0x5f   :  { %v3823_v63 = vld [vmem:[#allocation6 + $0x1ec] ss:$16 sps:$4 sm:$0xff]   ;;  %v3825_v0 = vld [vmem:[#allocation6 + $0x1e0] ss:$16 sps:$4 sm:$0xff]   ;;  %v3826_v1 = vld [vmem:[#allocation6 + $0x1e8] ss:$16 sps:$4 sm:$0xff]  }
  0x60   :  { %1329 = vmatpush1.bf16.msra.mxu0 %v3765_v22  ;;  %1493 = vmatpush1.bf16.msra.mxu1 %v3766_v23  ;;  %v102_v2 = vld [vmem:[#allocation3] sm:$0xff]  ;;  %v3829_v3 = vld [vmem:[#allocation6 + $0x204] ss:$16 sps:$4 sm:$0xff]   ;;  %v3827_v6 = vld [vmem:[#allocation6 + $0x200] ss:$16 sps:$4 sm:$0xff]   ;;  %s4396_s22 = smov [#allocation11]  }
  0x61   :  { %1330 = vmatprep.subr.bf16.mxu0 %v3767_v24  ;;  %1494 = vmatprep.subr.bf16.mxu1 %v3769_v25  ;;  %v3832_v4 = vld [vmem:[#allocation6 + $0x20c] ss:$16 sps:$4 sm:$0xff]   ;;  %v109_v5 = vpack.c.bf16 %v102_v2, %v102_v2  ;;  %v3830_v7 = vld [vmem:[#allocation6 + $0x208] ss:$16 sps:$4 sm:$0xff]   ;;  %v3835_v8 = vld [vmem:[#allocation6 + $0x224] ss:$16 sps:$4 sm:$0xff]  }
  0x62   :  { %v3838_v9 = vld [vmem:[#allocation6 + $0x22c] ss:$16 sps:$4 sm:$0xff]   ;;  %v3833_v10 = vld [vmem:[#allocation6 + $0x220] ss:$16 sps:$4 sm:$0xff]   ;;  %v3836_v11 = vld [vmem:[#allocation6 + $0x228] ss:$16 sps:$4 sm:$0xff]  }
  0x63   :  { %v3841_v12 = vld [vmem:[#allocation6 + $0x244] ss:$16 sps:$4 sm:$0xff]   ;;  %v3844_v13 = vld [vmem:[#allocation6 + $0x24c] ss:$16 sps:$4 sm:$0xff]   ;;  %v3839_v14 = vld [vmem:[#allocation6 + $0x240] ss:$16 sps:$4 sm:$0xff]  }
  0x64   :  { %1331 = vmatpush1.bf16.msra.mxu0 %v3771_v26  ;;  %1495 = vmatpush1.bf16.msra.mxu1 %v3772_v27  ;;  %v3842_v15 = vld [vmem:[#allocation6 + $0x248] ss:$16 sps:$4 sm:$0xff]   ;;  %v3847_v16 = vld [vmem:[#allocation6 + $0x264] ss:$16 sps:$4 sm:$0xff]   ;;  %v3850_v17 = vld [vmem:[#allocation6 + $0x26c] ss:$16 sps:$4 sm:$0xff]   ;;  %v99_v26 = vstv %s98_s19 }
  0x65   :  { %1332 = vmatprep.subr.bf16.mxu0 %v3773_v28  ;;  %1496 = vmatprep.subr.bf16.mxu1 %v3775_v29  ;;  %v3845_v18 = vld [vmem:[#allocation6 + $0x260] ss:$16 sps:$4 sm:$0xff]   ;;  %v3848_v19 = vld [vmem:[#allocation6 + $0x268] ss:$16 sps:$4 sm:$0xff]   ;;  %v3853_v20 = vld [vmem:[#allocation6 + $0x284] ss:$16 sps:$4 sm:$0xff]   ;;  %4249 = vrcp.f32 %v99_v26 }
  0x66   :  { %v3856_v21 = vld [vmem:[#allocation6 + $0x28c] ss:$16 sps:$4 sm:$0xff]   ;;  %v3851_v22 = vld [vmem:[#allocation6 + $0x280] ss:$16 sps:$4 sm:$0xff]   ;;  %v3854_v23 = vld [vmem:[#allocation6 + $0x288] ss:$16 sps:$4 sm:$0xff]  }
  0x67   :  { %v3859_v24 = vld [vmem:[#allocation6 + $0x2a4] ss:$16 sps:$4 sm:$0xff]   ;;  %v3862_v25 = vld [vmem:[#allocation6 + $0x2ac] ss:$16 sps:$4 sm:$0xff]   ;;  %v3857_v27 = vld [vmem:[#allocation6 + $0x2a0] ss:$16 sps:$4 sm:$0xff]  }
  0x68   :  { %1333 = vmatpush1.bf16.msra.mxu0 %v3777_v30  ;;  %1497 = vmatpush1.bf16.msra.mxu1 %v3778_v31  ;;  %v3860_v28 = vld [vmem:[#allocation6 + $0x2a8] ss:$16 sps:$4 sm:$0xff]   ;;  %v3865_v29 = vld [vmem:[#allocation6 + $0x2c4] ss:$16 sps:$4 sm:$0xff]   ;;  %v3868_v30 = vld [vmem:[#allocation6 + $0x2cc] ss:$16 sps:$4 sm:$0xff]  }
  0x69   :  { %1334 = vmatprep.subr.bf16.mxu0 %v3779_v32  ;;  %1498 = vmatprep.subr.bf16.mxu1 %v3781_v33  ;;  %v105_v31 = vld [vmem:[#allocation3 + $0x18] sm:$0xff]  ;;  %s3265_s29 = sshll.u32 %s4396_s22, 4  ;;  %s3266_s29 = int_to_ptr.vmem [resolvable:$true] %s3265_s29 }
  0x6a   :  { %v3863_v32 = vld [vmem:[#allocation6 + $0x2c0] ss:$16 sps:$4 sm:$0xff]   ;;  %v112_v33 = vpack.c.bf16 %v105_v31, %v105_v31  ;;  %v3889_v48 = vld [vmem:[#allocation6 + $0x344] ss:$16 sps:$4 sm:$0xff]   ;;  %v3950_v31 = vld [vmem:[#allocation6 + $0x488] ss:$16 sps:$4 sm:$0xff]   ;;  %p4362_p5 = scmp.lt.s32.totalorder %s3266_s29, %s3266_s29 }
  0x6b   :  { %v3881_v46 = vld [vmem:[#allocation6 + $0x320] ss:$16 sps:$4 sm:$0xff]  }
  0x6c   :  { %1335 = vmatpush1.bf16.msra.mxu0 %v3783_v34  ;;  %1499 = vmatpush1.bf16.msra.mxu1 %v3784_v35  ;;  %v3866_v34 = vld [vmem:[#allocation6 + $0x2c8] ss:$16 sps:$4 sm:$0xff]   ;;  %v3871_v35 = vld [vmem:[#allocation6 + $0x2e4] ss:$16 sps:$4 sm:$0xff]   ;;  %v3911_v2 = vld [vmem:[#allocation6 + $0x3c0] ss:$16 sps:$4 sm:$0xff]  }
  0x6d   :  { %1336 = vmatprep.subr.bf16.mxu0 %v3785_v36  ;;  %1500 = vmatprep.subr.bf16.mxu1 %v3787_v37  ;;  %v3874_v36 = vld [vmem:[#allocation6 + $0x2ec] ss:$16 sps:$4 sm:$0xff]   ;;  %v3869_v37 = vld [vmem:[#allocation6 + $0x2e0] ss:$16 sps:$4 sm:$0xff]  }
  0x6e   :  { %v3941_v26 = vld [vmem:[#allocation6 + $0x460] ss:$16 sps:$4 sm:$0xff]  }
  0x70   :  { %1337 = vmatpush1.bf16.msra.mxu0 %v3789_v38  ;;  %1501 = vmatpush1.bf16.msra.mxu1 %v3790_v39  ;;  %v3872_v38 = vld [vmem:[#allocation6 + $0x2e8] ss:$16 sps:$4 sm:$0xff]   ;;  %v4250_v39 = vpop.eup %4249 }
  0x71   :  { %1338 = vmatprep.subr.bf16.mxu0 %v3791_v40  ;;  %1502 = vmatprep.subr.bf16.mxu1 %v3793_v41  ;;  %v3877_v40 = vld [vmem:[#allocation6 + $0x304] ss:$16 sps:$4 sm:$0xff]   ;;  %v3880_v41 = vld [vmem:[#allocation6 + $0x30c] ss:$16 sps:$4 sm:$0xff]   ;;  %3719 = vpush %v4250_v39  ;;  %v3962_v39 = vld [vmem:[#allocation6 + $0x4c8] ss:$16 sps:$4 sm:$0xff]  }
  0x74   :  { %1339 = vmatpush1.bf16.msra.mxu0 %v3795_v42  ;;  %1503 = vmatpush1.bf16.msra.mxu1 %v3796_v43  ;;  %v3875_v42 = vld [vmem:[#allocation6 + $0x300] ss:$16 sps:$4 sm:$0xff]   ;;  %v3878_v43 = vld [vmem:[#allocation6 + $0x308] ss:$16 sps:$4 sm:$0xff]  }
  0x75   :  { %1340 = vmatprep.subr.bf16.mxu0 %v3797_v44  ;;  %1504 = vmatprep.subr.bf16.mxu1 %v3799_v45  ;;  %v3883_v44 = vld [vmem:[#allocation6 + $0x324] ss:$16 sps:$4 sm:$0xff]   ;;  %v3886_v45 = vld [vmem:[#allocation6 + $0x32c] ss:$16 sps:$4 sm:$0xff]  }
  0x78   :  { %1341 = vmatpush1.bf16.msra.mxu0 %v3801_v47  ;;  %1505 = vmatpush1.bf16.msra.mxu1 %v3802_v49  ;;  %v3884_v47 = vld [vmem:[#allocation6 + $0x328] ss:$16 sps:$4 sm:$0xff]   ;;  %v3892_v49 = vld [vmem:[#allocation6 + $0x34c] ss:$16 sps:$4 sm:$0xff]  }
  0x79   :  { %1342 = vmatprep.subr.bf16.mxu0 %v3803_v50  ;;  %1506 = vmatprep.subr.bf16.mxu1 %v3805_v51  ;;  %v3887_v50 = vld [vmem:[#allocation6 + $0x340] ss:$16 sps:$4 sm:$0xff]   ;;  %v3890_v51 = vld [vmem:[#allocation6 + $0x348] ss:$16 sps:$4 sm:$0xff]  }
  0x7c   :  { %1343 = vmatpush1.bf16.msra.mxu0 %v3807_v52  ;;  %1507 = vmatpush1.bf16.msra.mxu1 %v3808_v53  ;;  %v3895_v52 = vld [vmem:[#allocation6 + $0x364] ss:$16 sps:$4 sm:$0xff]   ;;  %v3898_v53 = vld [vmem:[#allocation6 + $0x36c] ss:$16 sps:$4 sm:$0xff]  }
  0x7d   :  { %1344 = vmatprep.subr.bf16.mxu0 %v3809_v54  ;;  %1508 = vmatprep.subr.bf16.mxu1 %v3811_v55  ;;  %v3893_v54 = vld [vmem:[#allocation6 + $0x360] ss:$16 sps:$4 sm:$0xff]   ;;  %v3896_v55 = vld [vmem:[#allocation6 + $0x368] ss:$16 sps:$4 sm:$0xff]  }
  0x80   :  { %1345 = vmatpush1.bf16.msra.mxu0 %v3813_v56  ;;  %1509 = vmatpush1.bf16.msra.mxu1 %v3814_v57  ;;  %v3901_v56 = vld [vmem:[#allocation6 + $0x384] ss:$16 sps:$4 sm:$0xff]   ;;  %v3904_v57 = vld [vmem:[#allocation6 + $0x38c] ss:$16 sps:$4 sm:$0xff]  }
  0x81   :  { %1346 = vmatprep.subr.bf16.mxu0 %v3815_v58  ;;  %1510 = vmatprep.subr.bf16.mxu1 %v3817_v59  ;;  %v3899_v58 = vld [vmem:[#allocation6 + $0x380] ss:$16 sps:$4 sm:$0xff]   ;;  %v3902_v59 = vld [vmem:[#allocation6 + $0x388] ss:$16 sps:$4 sm:$0xff]  }
  0x84   :  { %1347 = vmatpush1.bf16.msra.mxu0 %v3819_v60  ;;  %1511 = vmatpush1.bf16.msra.mxu1 %v3820_v61  ;;  %v3907_v60 = vld [vmem:[#allocation6 + $0x3a4] ss:$16 sps:$4 sm:$0xff]   ;;  %v3910_v61 = vld [vmem:[#allocation6 + $0x3ac] ss:$16 sps:$4 sm:$0xff]  }
  0x85   :  { %1348 = vmatprep.subr.bf16.mxu0 %v3821_v62  ;;  %1512 = vmatprep.subr.bf16.mxu1 %v3823_v63  ;;  %v3905_v62 = vld [vmem:[#allocation6 + $0x3a0] ss:$16 sps:$4 sm:$0xff]   ;;  %v3908_v63 = vld [vmem:[#allocation6 + $0x3a8] ss:$16 sps:$4 sm:$0xff]  }
  0x88   :  { %1349 = vmatpush1.bf16.msra.mxu0 %v3825_v0  ;;  %1513 = vmatpush1.bf16.msra.mxu1 %v3826_v1  ;;  %v3913_v0 = vld [vmem:[#allocation6 + $0x3c4] ss:$16 sps:$4 sm:$0xff]   ;;  %v3916_v1 = vld [vmem:[#allocation6 + $0x3cc] ss:$16 sps:$4 sm:$0xff]  }
  0x89   :  { %1359 = vmatprep.subr.bf16.mxu0 %v3829_v3  ;;  %1523 = vmatprep.subr.bf16.mxu1 %v3832_v4  ;;  %v3914_v3 = vld [vmem:[#allocation6 + $0x3c8] ss:$16 sps:$4 sm:$0xff]   ;;  %v3919_v4 = vld [vmem:[#allocation6 + $0x3e4] ss:$16 sps:$4 sm:$0xff]  }
  0x8b   :  { %1351 = vmatmul.mubr.bf16.vlgmr.msra.gmra.mrb[0].mxu0 %v109_v5  ;;  %1515 = vmatmul.mubr.bf16.vlgmr.msra.gmra.mrb[0].mxu1 %v109_v5  ;;  %v3922_v5 = vld [vmem:[#allocation6 + $0x3ec] ss:$16 sps:$4 sm:$0xff]  }
  0x8c   :  { %1360 = vmatpush1.bf16.msra.mxu0 %v3827_v6  ;;  %1524 = vmatpush1.bf16.msra.mxu1 %v3830_v7  ;;  %v3917_v6 = vld [vmem:[#allocation6 + $0x3e0] ss:$16 sps:$4 sm:$0xff]   ;;  %v3920_v7 = vld [vmem:[#allocation6 + $0x3e8] ss:$16 sps:$4 sm:$0xff]  }
  0x8d   :  { %1361 = vmatprep.subr.bf16.mxu0 %v3835_v8  ;;  %1525 = vmatprep.subr.bf16.mxu1 %v3838_v9  ;;  %v3925_v8 = vld [vmem:[#allocation6 + $0x404] ss:$16 sps:$4 sm:$0xff]   ;;  %v104_v9 = vld [vmem:[#allocation3 + $0x10] sm:$0xff] }
  0x8e   :  { %1391 = vmatprep.mubr.bf16.mxu0 %v112_v33  ;;  %1555 = vmatprep.mubr.bf16.mxu1 %v112_v33  ;;  %v3958_v33 = vld [vmem:[#allocation6 + $0x4ac] ss:$16 sps:$4 sm:$0xff]  }
  0x90   :  { %1362 = vmatpush1.bf16.msra.mxu0 %v3833_v10  ;;  %1526 = vmatpush1.bf16.msra.mxu1 %v3836_v11  ;;  %v3928_v10 = vld [vmem:[#allocation6 + $0x40c] ss:$16 sps:$4 sm:$0xff]   ;;  %v3923_v11 = vld [vmem:[#allocation6 + $0x400] ss:$16 sps:$4 sm:$0xff]  }
  0x91   :  { %1363 = vmatprep.subr.bf16.mxu0 %v3841_v12  ;;  %1527 = vmatprep.subr.bf16.mxu1 %v3844_v13  ;;  %v111_v12 = vpack.c.bf16 %v104_v9, %v104_v9  ;;  %v3926_v13 = vld [vmem:[#allocation6 + $0x408] ss:$16 sps:$4 sm:$0xff]   ;;  %v4018_v9 = vld [vmem:[#allocation6 + $0x5ec] ss:$16 sps:$4 sm:$0xff]  }
  0x94   :  { %1364 = vmatpush1.bf16.msra.mxu0 %v3839_v14  ;;  %1528 = vmatpush1.bf16.msra.mxu1 %v3842_v15  ;;  %v3931_v14 = vld [vmem:[#allocation6 + $0x424] ss:$16 sps:$4 sm:$0xff]   ;;  %v3934_v15 = vld [vmem:[#allocation6 + $0x42c] ss:$16 sps:$4 sm:$0xff]  }
  0x95   :  { %1365 = vmatprep.subr.bf16.mxu0 %v3847_v16  ;;  %1529 = vmatprep.subr.bf16.mxu1 %v3850_v17  ;;  %v107_v16 = vld [vmem:[#allocation3 + $0x28] sm:$0xff] }
  0x96   :  { %v114_v17 = vpack.c.bf16 %v107_v16, %v107_v16  ;;  %v4022_v16 = vld [vmem:[#allocation6 + $0x608] ss:$16 sps:$4 sm:$0xff]  }
  0x98   :  { %1366 = vmatpush1.bf16.msra.mxu0 %v3845_v18  ;;  %1530 = vmatpush1.bf16.msra.mxu1 %v3848_v19  ;;  %v3929_v18 = vld [vmem:[#allocation6 + $0x420] ss:$16 sps:$4 sm:$0xff]   ;;  %v3932_v19 = vld [vmem:[#allocation6 + $0x428] ss:$16 sps:$4 sm:$0xff]  }
  0x99   :  { %1367 = vmatprep.subr.bf16.mxu0 %v3853_v20  ;;  %1531 = vmatprep.subr.bf16.mxu1 %v3856_v21  ;;  %v3937_v20 = vld [vmem:[#allocation6 + $0x444] ss:$16 sps:$4 sm:$0xff]   ;;  %v3940_v21 = vld [vmem:[#allocation6 + $0x44c] ss:$16 sps:$4 sm:$0xff]  }
  0x9c   :  { %1368 = vmatpush1.bf16.msra.mxu0 %v3851_v22  ;;  %1532 = vmatpush1.bf16.msra.mxu1 %v3854_v23  ;;  %v3935_v22 = vld [vmem:[#allocation6 + $0x440] ss:$16 sps:$4 sm:$0xff]   ;;  %v3938_v23 = vld [vmem:[#allocation6 + $0x448] ss:$16 sps:$4 sm:$0xff]  }
  0x9d   :  { %1369 = vmatprep.subr.bf16.mxu0 %v3859_v24  ;;  %1533 = vmatprep.subr.bf16.mxu1 %v3862_v25  ;;  %v3943_v24 = vld [vmem:[#allocation6 + $0x464] ss:$16 sps:$4 sm:$0xff]   ;;  %v3946_v25 = vld [vmem:[#allocation6 + $0x46c] ss:$16 sps:$4 sm:$0xff]  }
  0xa0   :  { %1370 = vmatpush1.bf16.msra.mxu0 %v3857_v27  ;;  %1534 = vmatpush1.bf16.msra.mxu1 %v3860_v28  ;;  %v3944_v27 = vld [vmem:[#allocation6 + $0x468] ss:$16 sps:$4 sm:$0xff]   ;;  %v3949_v28 = vld [vmem:[#allocation6 + $0x484] ss:$16 sps:$4 sm:$0xff]  }
  0xa1   :  { %1371 = vmatprep.subr.bf16.mxu0 %v3865_v29  ;;  %1535 = vmatprep.subr.bf16.mxu1 %v3868_v30  ;;  %v3952_v29 = vld [vmem:[#allocation6 + $0x48c] ss:$16 sps:$4 sm:$0xff]   ;;  %v3947_v30 = vld [vmem:[#allocation6 + $0x480] ss:$16 sps:$4 sm:$0xff]  }
  0xa4   :  { %1372 = vmatpush1.bf16.msra.mxu0 %v3863_v32  ;;  %1536 = vmatpush1.bf16.msra.mxu1 %v3866_v34  ;;  %v3955_v32 = vld [vmem:[#allocation6 + $0x4a4] ss:$16 sps:$4 sm:$0xff]   ;;  %v3953_v34 = vld [vmem:[#allocation6 + $0x4a0] ss:$16 sps:$4 sm:$0xff]  }
  0xa5   :  { %1373 = vmatprep.subr.bf16.mxu0 %v3871_v35  ;;  %1537 = vmatprep.subr.bf16.mxu1 %v3874_v36  ;;  %v3956_v35 = vld [vmem:[#allocation6 + $0x4a8] ss:$16 sps:$4 sm:$0xff]   ;;  %v3961_v36 = vld [vmem:[#allocation6 + $0x4c4] ss:$16 sps:$4 sm:$0xff]  }
  0xa8   :  { %1374 = vmatpush1.bf16.msra.mxu0 %v3869_v37  ;;  %1538 = vmatpush1.bf16.msra.mxu1 %v3872_v38  ;;  %v3964_v37 = vld [vmem:[#allocation6 + $0x4cc] ss:$16 sps:$4 sm:$0xff]   ;;  %v3959_v38 = vld [vmem:[#allocation6 + $0x4c0] ss:$16 sps:$4 sm:$0xff]  }
  0xa9   :  { %1375 = vmatprep.subr.bf16.mxu0 %v3877_v40  ;;  %1539 = vmatprep.subr.bf16.mxu1 %v3880_v41  ;;  %v3967_v40 = vld [vmem:[#allocation6 + $0x4e4] ss:$16 sps:$4 sm:$0xff]   ;;  %v3970_v41 = vld [vmem:[#allocation6 + $0x4ec] ss:$16 sps:$4 sm:$0xff]  }
  0xac   :  { %1376 = vmatpush1.bf16.msra.mxu0 %v3875_v42  ;;  %1540 = vmatpush1.bf16.msra.mxu1 %v3878_v43  ;;  %v3965_v42 = vld [vmem:[#allocation6 + $0x4e0] ss:$16 sps:$4 sm:$0xff]   ;;  %v3968_v43 = vld [vmem:[#allocation6 + $0x4e8] ss:$16 sps:$4 sm:$0xff]  }
  0xad   :  { %1377 = vmatprep.subr.bf16.mxu0 %v3883_v44  ;;  %1541 = vmatprep.subr.bf16.mxu1 %v3886_v45  ;;  %v3973_v44 = vld [vmem:[#allocation6 + $0x504] ss:$16 sps:$4 sm:$0xff]   ;;  %v3976_v45 = vld [vmem:[#allocation6 + $0x50c] ss:$16 sps:$4 sm:$0xff]  }
  0xb0   :  { %1378 = vmatpush1.bf16.msra.mxu0 %v3881_v46  ;;  %1542 = vmatpush1.bf16.msra.mxu1 %v3884_v47  ;;  %v3971_v46 = vld [vmem:[#allocation6 + $0x500] ss:$16 sps:$4 sm:$0xff]   ;;  %v3974_v47 = vld [vmem:[#allocation6 + $0x508] ss:$16 sps:$4 sm:$0xff]  }
  0xb1   :  { %1379 = vmatprep.subr.bf16.mxu0 %v3889_v48  ;;  %1543 = vmatprep.subr.bf16.mxu1 %v3892_v49  ;;  %v3979_v48 = vld [vmem:[#allocation6 + $0x524] ss:$16 sps:$4 sm:$0xff]   ;;  %v3982_v49 = vld [vmem:[#allocation6 + $0x52c] ss:$16 sps:$4 sm:$0xff]  }
  0xb4   :  { %1380 = vmatpush1.bf16.msra.mxu0 %v3887_v50  ;;  %1544 = vmatpush1.bf16.msra.mxu1 %v3890_v51  ;;  %v3977_v50 = vld [vmem:[#allocation6 + $0x520] ss:$16 sps:$4 sm:$0xff]   ;;  %v3980_v51 = vld [vmem:[#allocation6 + $0x528] ss:$16 sps:$4 sm:$0xff]  }
  0xb5   :  { %1381 = vmatprep.subr.bf16.mxu0 %v3895_v52  ;;  %1545 = vmatprep.subr.bf16.mxu1 %v3898_v53  ;;  %v3985_v52 = vld [vmem:[#allocation6 + $0x544] ss:$16 sps:$4 sm:$0xff]   ;;  %v3988_v53 = vld [vmem:[#allocation6 + $0x54c] ss:$16 sps:$4 sm:$0xff]  }
  0xb8   :  { %1382 = vmatpush1.bf16.msra.mxu0 %v3893_v54  ;;  %1546 = vmatpush1.bf16.msra.mxu1 %v3896_v55  ;;  %v3983_v54 = vld [vmem:[#allocation6 + $0x540] ss:$16 sps:$4 sm:$0xff]   ;;  %v3986_v55 = vld [vmem:[#allocation6 + $0x548] ss:$16 sps:$4 sm:$0xff]  }
  0xb9   :  { %1383 = vmatprep.subr.bf16.mxu0 %v3901_v56  ;;  %1547 = vmatprep.subr.bf16.mxu1 %v3904_v57  ;;  %v3991_v56 = vld [vmem:[#allocation6 + $0x564] ss:$16 sps:$4 sm:$0xff]   ;;  %v3994_v57 = vld [vmem:[#allocation6 + $0x56c] ss:$16 sps:$4 sm:$0xff]  }
  0xbc   :  { %1384 = vmatpush1.bf16.msra.mxu0 %v3899_v58  ;;  %1548 = vmatpush1.bf16.msra.mxu1 %v3902_v59  ;;  %v3989_v58 = vld [vmem:[#allocation6 + $0x560] ss:$16 sps:$4 sm:$0xff]   ;;  %v3992_v59 = vld [vmem:[#allocation6 + $0x568] ss:$16 sps:$4 sm:$0xff]  }
  0xbd   :  { %1385 = vmatprep.subr.bf16.mxu0 %v3907_v60  ;;  %1549 = vmatprep.subr.bf16.mxu1 %v3910_v61  ;;  %v3997_v60 = vld [vmem:[#allocation6 + $0x584] ss:$16 sps:$4 sm:$0xff]   ;;  %v4000_v61 = vld [vmem:[#allocation6 + $0x58c] ss:$16 sps:$4 sm:$0xff]  }
  0xc0   :  { %1386 = vmatpush1.bf16.msra.mxu0 %v3905_v62  ;;  %1550 = vmatpush1.bf16.msra.mxu1 %v3908_v63  ;;  %v3995_v62 = vld [vmem:[#allocation6 + $0x580] ss:$16 sps:$4 sm:$0xff]   ;;  %v3998_v63 = vld [vmem:[#allocation6 + $0x588] ss:$16 sps:$4 sm:$0xff]  }
  0xc1   :  { %1387 = vmatprep.subr.bf16.mxu0 %v3913_v0  ;;  %1551 = vmatprep.subr.bf16.mxu1 %v3916_v1  ;;  %v4003_v0 = vld [vmem:[#allocation6 + $0x5a4] ss:$16 sps:$4 sm:$0xff]   ;;  %v4006_v1 = vld [vmem:[#allocation6 + $0x5ac] ss:$16 sps:$4 sm:$0xff]  }
  0xc4   :  { %1388 = vmatpush1.bf16.msra.mxu0 %v3911_v2  ;;  %1552 = vmatpush1.bf16.msra.mxu1 %v3914_v3  ;;  %v4001_v2 = vld [vmem:[#allocation6 + $0x5a0] ss:$16 sps:$4 sm:$0xff]   ;;  %v4004_v3 = vld [vmem:[#allocation6 + $0x5a8] ss:$16 sps:$4 sm:$0xff]  }
  0xc5   :  { %1389 = vmatprep.subr.bf16.mxu0 %v3919_v4  ;;  %1553 = vmatprep.subr.bf16.mxu1 %v3922_v5  ;;  %v4009_v4 = vld [vmem:[#allocation6 + $0x5c4] ss:$16 sps:$4 sm:$0xff]   ;;  %v4012_v5 = vld [vmem:[#allocation6 + $0x5cc] ss:$16 sps:$4 sm:$0xff]  }
  0xc8   :  { %1390 = vmatpush1.bf16.msra.mxu0 %v3917_v6  ;;  %1554 = vmatpush1.bf16.msra.mxu1 %v3920_v7  ;;  %v4007_v6 = vld [vmem:[#allocation6 + $0x5c0] ss:$16 sps:$4 sm:$0xff]   ;;  %v4010_v7 = vld [vmem:[#allocation6 + $0x5c8] ss:$16 sps:$4 sm:$0xff]  }
  0xc9   :  { %1400 = vmatprep.subr.bf16.mxu0 %v3925_v8  ;;  %1564 = vmatprep.subr.bf16.mxu1 %v3928_v10  ;;  %v4015_v8 = vld [vmem:[#allocation6 + $0x5e4] ss:$16 sps:$4 sm:$0xff]   ;;  %v4013_v10 = vld [vmem:[#allocation6 + $0x5e0] ss:$16 sps:$4 sm:$0xff]  }
  0xcb   :  { %1392 = vmatmul.mubr.bf16.vlgmr.msra.gmra.mrb[0].mxu0 %v111_v12  ;;  %1556 = vmatmul.mubr.bf16.vlgmr.msra.gmra.mrb[0].mxu1 %v111_v12  ;;  %v106_v12 = vld [vmem:[#allocation3 + $0x20] sm:$0xff] }
  0xcc   :  { %1401 = vmatpush1.bf16.msra.mxu0 %v3923_v11  ;;  %1565 = vmatpush1.bf16.msra.mxu1 %v3926_v13  ;;  %v4016_v11 = vld [vmem:[#allocation6 + $0x5e8] ss:$16 sps:$4 sm:$0xff]   ;;  %v4021_v13 = vld [vmem:[#allocation6 + $0x604] ss:$16 sps:$4 sm:$0xff]  }
  0xcd   :  { %1402 = vmatprep.subr.bf16.mxu0 %v3931_v14  ;;  %1566 = vmatprep.subr.bf16.mxu1 %v3934_v15  ;;  %v4024_v14 = vld [vmem:[#allocation6 + $0x60c] ss:$16 sps:$4 sm:$0xff]   ;;  %v4019_v15 = vld [vmem:[#allocation6 + $0x600] ss:$16 sps:$4 sm:$0xff]  }
  0xce   :  { %1432 = vmatprep.mubr.bf16.mxu0 %v114_v17  ;;  %1596 = vmatprep.mubr.bf16.mxu1 %v114_v17  ;;  %v113_v17 = vpack.c.bf16 %v106_v12, %v106_v12  ;;  %v4106_v12 = vld [vmem:[#allocation8 + $0x1a8] ss:$16 sps:$4 sm:$0xff]  }
  0xd0   :  { %1403 = vmatpush1.bf16.msra.mxu0 %v3929_v18  ;;  %1567 = vmatpush1.bf16.msra.mxu1 %v3932_v19  ;;  %v4027_v18 = vld [vmem:[#allocation8 + $0x4] ss:$16 sps:$4 sm:$0xff]   ;;  %v4030_v19 = vld [vmem:[#allocation8 + $0xc] ss:$16 sps:$4 sm:$0xff]  }
  0xd1   :  { %1404 = vmatprep.subr.bf16.mxu0 %v3937_v20  ;;  %1568 = vmatprep.subr.bf16.mxu1 %v3940_v21  ;;  %v4395_v20 = vmov 0   ;;  %v108_v21 = vld [vmem:[#allocation3 + $0x30] sm:$0xff] }
  0xd4   :  { %1405 = vmatpush1.bf16.msra.mxu0 %v3935_v22  ;;  %1569 = vmatpush1.bf16.msra.mxu1 %v3938_v23  ;;  %v115_v22 = vpack.c.bf16 %v108_v21, %v108_v21  ;;  %v4025_v23 = vld [vmem:[#allocation8] ss:$16 sps:$4 sm:$0xff]   ;;  %v4123_v21 = vld [vmem:[#allocation8 + $0x204] ss:$16 sps:$4 sm:$0xff]  }
  0xd5   :  { %1406 = vmatprep.subr.bf16.mxu0 %v3943_v24  ;;  %1570 = vmatprep.subr.bf16.mxu1 %v3946_v25  ;;  %v4028_v24 = vld [vmem:[#allocation8 + $0x8] ss:$16 sps:$4 sm:$0xff]   ;;  %v4033_v25 = vld [vmem:[#allocation8 + $0x24] ss:$16 sps:$4 sm:$0xff]  }
  0xd8   :  { %1407 = vmatpush1.bf16.msra.mxu0 %v3941_v26  ;;  %1571 = vmatpush1.bf16.msra.mxu1 %v3944_v27  ;;  %v4036_v26 = vld [vmem:[#allocation8 + $0x2c] ss:$16 sps:$4 sm:$0xff]   ;;  %v4031_v27 = vld [vmem:[#allocation8 + $0x20] ss:$16 sps:$4 sm:$0xff]  }
  0xd9   :  { %1408 = vmatprep.subr.bf16.mxu0 %v3949_v28  ;;  %1572 = vmatprep.subr.bf16.mxu1 %v3952_v29  ;;  %v4034_v28 = vld [vmem:[#allocation8 + $0x28] ss:$16 sps:$4 sm:$0xff]   ;;  %v4039_v29 = vld [vmem:[#allocation8 + $0x44] ss:$16 sps:$4 sm:$0xff]  }
  0xdc   :  { %1409 = vmatpush1.bf16.msra.mxu0 %v3947_v30  ;;  %1573 = vmatpush1.bf16.msra.mxu1 %v3950_v31  ;;  %v4042_v30 = vld [vmem:[#allocation8 + $0x4c] ss:$16 sps:$4 sm:$0xff]   ;;  %v4037_v31 = vld [vmem:[#allocation8 + $0x40] ss:$16 sps:$4 sm:$0xff]  }
  0xdd   :  { %1410 = vmatprep.subr.bf16.mxu0 %v3955_v32  ;;  %1574 = vmatprep.subr.bf16.mxu1 %v3958_v33  ;;  %v4040_v32 = vld [vmem:[#allocation8 + $0x48] ss:$16 sps:$4 sm:$0xff]   ;;  %v4045_v33 = vld [vmem:[#allocation8 + $0x64] ss:$16 sps:$4 sm:$0xff]  }
  0xe0   :  { %1411 = vmatpush1.bf16.msra.mxu0 %v3953_v34  ;;  %1575 = vmatpush1.bf16.msra.mxu1 %v3956_v35  ;;  %v4048_v34 = vld [vmem:[#allocation8 + $0x6c] ss:$16 sps:$4 sm:$0xff]   ;;  %v4043_v35 = vld [vmem:[#allocation8 + $0x60] ss:$16 sps:$4 sm:$0xff]  }
  0xe1   :  { %1412 = vmatprep.subr.bf16.mxu0 %v3961_v36  ;;  %1576 = vmatprep.subr.bf16.mxu1 %v3964_v37  ;;  %v4046_v36 = vld [vmem:[#allocation8 + $0x68] ss:$16 sps:$4 sm:$0xff]   ;;  %v4051_v37 = vld [vmem:[#allocation8 + $0x84] ss:$16 sps:$4 sm:$0xff]  }
  0xe4   :  { %1413 = vmatpush1.bf16.msra.mxu0 %v3959_v38  ;;  %1577 = vmatpush1.bf16.msra.mxu1 %v3962_v39  ;;  %v4054_v38 = vld [vmem:[#allocation8 + $0x8c] ss:$16 sps:$4 sm:$0xff]   ;;  %v4049_v39 = vld [vmem:[#allocation8 + $0x80] ss:$16 sps:$4 sm:$0xff]  }
  0xe5   :  { %1414 = vmatprep.subr.bf16.mxu0 %v3967_v40  ;;  %1578 = vmatprep.subr.bf16.mxu1 %v3970_v41  ;;  %v4052_v40 = vld [vmem:[#allocation8 + $0x88] ss:$16 sps:$4 sm:$0xff]   ;;  %v4057_v41 = vld [vmem:[#allocation8 + $0xa4] ss:$16 sps:$4 sm:$0xff]  }
  0xe8   :  { %1415 = vmatpush1.bf16.msra.mxu0 %v3965_v42  ;;  %1579 = vmatpush1.bf16.msra.mxu1 %v3968_v43  ;;  %v4060_v42 = vld [vmem:[#allocation8 + $0xac] ss:$16 sps:$4 sm:$0xff]   ;;  %v4055_v43 = vld [vmem:[#allocation8 + $0xa0] ss:$16 sps:$4 sm:$0xff]  }
  0xe9   :  { %1416 = vmatprep.subr.bf16.mxu0 %v3973_v44  ;;  %1580 = vmatprep.subr.bf16.mxu1 %v3976_v45  ;;  %v4058_v44 = vld [vmem:[#allocation8 + $0xa8] ss:$16 sps:$4 sm:$0xff]   ;;  %v4063_v45 = vld [vmem:[#allocation8 + $0xc4] ss:$16 sps:$4 sm:$0xff]  }
  0xec   :  { %1417 = vmatpush1.bf16.msra.mxu0 %v3971_v46  ;;  %1581 = vmatpush1.bf16.msra.mxu1 %v3974_v47  ;;  %v4066_v46 = vld [vmem:[#allocation8 + $0xcc] ss:$16 sps:$4 sm:$0xff]   ;;  %v4061_v47 = vld [vmem:[#allocation8 + $0xc0] ss:$16 sps:$4 sm:$0xff]  }
  0xed   :  { %1418 = vmatprep.subr.bf16.mxu0 %v3979_v48  ;;  %1582 = vmatprep.subr.bf16.mxu1 %v3982_v49  ;;  %v4064_v48 = vld [vmem:[#allocation8 + $0xc8] ss:$16 sps:$4 sm:$0xff]   ;;  %v4069_v49 = vld [vmem:[#allocation8 + $0xe4] ss:$16 sps:$4 sm:$0xff]  }
  0xf0   :  { %1419 = vmatpush1.bf16.msra.mxu0 %v3977_v50  ;;  %1583 = vmatpush1.bf16.msra.mxu1 %v3980_v51  ;;  %v4072_v50 = vld [vmem:[#allocation8 + $0xec] ss:$16 sps:$4 sm:$0xff]   ;;  %v4067_v51 = vld [vmem:[#allocation8 + $0xe0] ss:$16 sps:$4 sm:$0xff]  }
  0xf1   :  { %1420 = vmatprep.subr.bf16.mxu0 %v3985_v52  ;;  %1584 = vmatprep.subr.bf16.mxu1 %v3988_v53  ;;  %v4070_v52 = vld [vmem:[#allocation8 + $0xe8] ss:$16 sps:$4 sm:$0xff]   ;;  %v4075_v53 = vld [vmem:[#allocation8 + $0x104] ss:$16 sps:$4 sm:$0xff]  }
  0xf4   :  { %1421 = vmatpush1.bf16.msra.mxu0 %v3983_v54  ;;  %1585 = vmatpush1.bf16.msra.mxu1 %v3986_v55  ;;  %v4078_v54 = vld [vmem:[#allocation8 + $0x10c] ss:$16 sps:$4 sm:$0xff]   ;;  %v4073_v55 = vld [vmem:[#allocation8 + $0x100] ss:$16 sps:$4 sm:$0xff]  }
  0xf5   :  { %1422 = vmatprep.subr.bf16.mxu0 %v3991_v56  ;;  %1586 = vmatprep.subr.bf16.mxu1 %v3994_v57  ;;  %v4076_v56 = vld [vmem:[#allocation8 + $0x108] ss:$16 sps:$4 sm:$0xff]   ;;  %v4081_v57 = vld [vmem:[#allocation8 + $0x124] ss:$16 sps:$4 sm:$0xff]  }
  0xf8   :  { %1423 = vmatpush1.bf16.msra.mxu0 %v3989_v58  ;;  %1587 = vmatpush1.bf16.msra.mxu1 %v3992_v59  ;;  %v4084_v58 = vld [vmem:[#allocation8 + $0x12c] ss:$16 sps:$4 sm:$0xff]   ;;  %v4079_v59 = vld [vmem:[#allocation8 + $0x120] ss:$16 sps:$4 sm:$0xff]  }
  0xf9   :  { %1424 = vmatprep.subr.bf16.mxu0 %v3997_v60  ;;  %1588 = vmatprep.subr.bf16.mxu1 %v4000_v61  ;;  %v4082_v60 = vld [vmem:[#allocation8 + $0x128] ss:$16 sps:$4 sm:$0xff]   ;;  %v4087_v61 = vld [vmem:[#allocation8 + $0x144] ss:$16 sps:$4 sm:$0xff]  }
  0xfc   :  { %1425 = vmatpush1.bf16.msra.mxu0 %v3995_v62  ;;  %1589 = vmatpush1.bf16.msra.mxu1 %v3998_v63  ;;  %v4090_v62 = vld [vmem:[#allocation8 + $0x14c] ss:$16 sps:$4 sm:$0xff]   ;;  %v4085_v63 = vld [vmem:[#allocation8 + $0x140] ss:$16 sps:$4 sm:$0xff]  }
  0xfd   :  { %1426 = vmatprep.subr.bf16.mxu0 %v4003_v0  ;;  %1590 = vmatprep.subr.bf16.mxu1 %v4006_v1  ;;  %v4088_v0 = vld [vmem:[#allocation8 + $0x148] ss:$16 sps:$4 sm:$0xff]   ;;  %v4093_v1 = vld [vmem:[#allocation8 + $0x164] ss:$16 sps:$4 sm:$0xff]  }
 0x100   :  { %1427 = vmatpush1.bf16.msra.mxu0 %v4001_v2  ;;  %1591 = vmatpush1.bf16.msra.mxu1 %v4004_v3  ;;  %v4096_v2 = vld [vmem:[#allocation8 + $0x16c] ss:$16 sps:$4 sm:$0xff]   ;;  %v4091_v3 = vld [vmem:[#allocation8 + $0x160] ss:$16 sps:$4 sm:$0xff]  }
 0x101   :  { %1428 = vmatprep.subr.bf16.mxu0 %v4009_v4  ;;  %1592 = vmatprep.subr.bf16.mxu1 %v4012_v5  ;;  %v4094_v4 = vld [vmem:[#allocation8 + $0x168] ss:$16 sps:$4 sm:$0xff]   ;;  %v4099_v5 = vld [vmem:[#allocation8 + $0x184] ss:$16 sps:$4 sm:$0xff]  }
 0x104   :  { %1429 = vmatpush1.bf16.msra.mxu0 %v4007_v6  ;;  %1593 = vmatpush1.bf16.msra.mxu1 %v4010_v7  ;;  %v4102_v6 = vld [vmem:[#allocation8 + $0x18c] ss:$16 sps:$4 sm:$0xff]   ;;  %v4097_v7 = vld [vmem:[#allocation8 + $0x180] ss:$16 sps:$4 sm:$0xff]  }
 0x105   :  { %1430 = vmatprep.subr.bf16.mxu0 %v4015_v8  ;;  %1594 = vmatprep.subr.bf16.mxu1 %v4018_v9  ;;  %v4100_v8 = vld [vmem:[#allocation8 + $0x188] ss:$16 sps:$4 sm:$0xff]   ;;  %v4105_v9 = vld [vmem:[#allocation8 + $0x1a4] ss:$16 sps:$4 sm:$0xff]  }
 0x108   :  { %1431 = vmatpush1.bf16.msra.mxu0 %v4013_v10  ;;  %1595 = vmatpush1.bf16.msra.mxu1 %v4016_v11  ;;  %v4108_v10 = vld [vmem:[#allocation8 + $0x1ac] ss:$16 sps:$4 sm:$0xff]   ;;  %v4103_v11 = vld [vmem:[#allocation8 + $0x1a0] ss:$16 sps:$4 sm:$0xff]  }
 0x109   :  { %1441 = vmatprep.subr.bf16.mxu0 %v4021_v13  ;;  %1605 = vmatprep.subr.bf16.mxu1 %v4024_v14  ;;  %v4111_v13 = vld [vmem:[#allocation8 + $0x1c4] ss:$16 sps:$4 sm:$0xff]   ;;  %v4114_v14 = vld [vmem:[#allocation8 + $0x1cc] ss:$16 sps:$4 sm:$0xff]  }
 0x10b   :  { %1433 = vmatmul.mubr.bf16.vlgmr.msra.gmra.mrb[0].mxu0 %v113_v17  ;;  %1597 = vmatmul.mubr.bf16.vlgmr.msra.gmra.mrb[0].mxu1 %v113_v17  ;;  %v4117_v17 = vld [vmem:[#allocation8 + $0x1e4] ss:$16 sps:$4 sm:$0xff]  }
 0x10c   :  { %1442 = vmatpush1.bf16.msra.mxu0 %v4019_v15  ;;  %1606 = vmatpush1.bf16.msra.mxu1 %v4022_v16  ;;  %v4109_v15 = vld [vmem:[#allocation8 + $0x1c0] ss:$16 sps:$4 sm:$0xff]   ;;  %v4112_v16 = vld [vmem:[#allocation8 + $0x1c8] ss:$16 sps:$4 sm:$0xff]  }
 0x10d   :  { %1473 = vmatprep.mubr.bf16.mxu0 %v4395_v20  ;;  %1637 = vmatprep.mubr.bf16.mxu1 %v4395_v20  ;;  %v4118_v20 = vld [vmem:[#allocation8 + $0x1e8] ss:$16 sps:$4 sm:$0xff]  }
 0x10e   :  { %2595 = vmatprep.subr.bf16.mxu0 %v4027_v18  ;;  %2677 = vmatprep.subr.bf16.mxu1 %v4030_v19  ;;  %v4120_v18 = vld [vmem:[#allocation8 + $0x1ec] ss:$16 sps:$4 sm:$0xff]   ;;  %v4115_v19 = vld [vmem:[#allocation8 + $0x1e0] ss:$16 sps:$4 sm:$0xff]  }
 0x117   :  { %3472 = vmatmul.mubr.msk.bf16.vlgmr.msra.gmra.mrb[0].mxu0 %vm1314_vm0, %v115_v22  ;;  %3473 = vmatmul.mubr.msk.bf16.vlgmr.msra.gmra.mrb[0].mxu1 %vm1314_vm0, %v115_v22  ;;  %v4126_v22 = vld [vmem:[#allocation8 + $0x20c] ss:$16 sps:$4 sm:$0xff]  }
 0x118   :  { %2596 = vmatpush1.bf16.msra.mxu0 %v4025_v23  ;;  %2678 = vmatpush1.bf16.msra.mxu1 %v4028_v24  ;;  %v314_v23 = vlaneseq }
 0x119   :  { %2597 = vmatprep.subr.bf16.mxu0 %v4033_v25  ;;  %2679 = vmatprep.subr.bf16.mxu1 %v4036_v26 }
 0x11a   :  { %v315_v24 = vshrl.u32 %v314_v23, 7 }
 0x11c   :  { %2598 = vmatpush1.bf16.msra.mxu0 %v4031_v27  ;;  %2680 = vmatpush1.bf16.msra.mxu1 %v4034_v28  ;;  %v4519_v25 = vsub.s32 0, %v315_v24  ;;  %v4521_v26 = vsub.s32 2, %v315_v24  ;;  %v312_v27 = vld [vmem:[%s4688_s3] sm:$0xf]  ;;  %v4526_v28 = vsub.s32 1, %v315_v24 }
 0x11d   :  { %2599 = vmatprep.subr.bf16.mxu0 %v4039_v29  ;;  %2681 = vmatprep.subr.bf16.mxu1 %v4042_v30  ;;  %v4528_v29 = vsub.s32 3, %v315_v24 }
 0x11e   :  { %v317_v30 = vrot.slane %v312_v27, %v4519_v25 }
 0x120   :  { %2600 = vmatpush1.bf16.msra.mxu0 %v4037_v31  ;;  %2682 = vmatpush1.bf16.msra.mxu1 %v4040_v32  ;;  %v325_v31 = vrot.slane %v312_v27, %v4521_v26  ;;  %v321_v32 = vrot.slane %v312_v27, %v4526_v28 }
 0x121   :  { %2601 = vmatprep.subr.bf16.mxu0 %v4045_v33  ;;  %2683 = vmatprep.subr.bf16.mxu1 %v4048_v34  ;;  %v329_v33 = vrot.slane %v312_v27, %v4528_v29  ;;  %v1652_v34 = vstv %s4685_s0  ;;  %s3720_s0 = spop %3719 }
 0x122   :  { %vm4541_vm1 = vcmp.lt.s32.totalorder %v315_v24, %v1652_v34 }
 0x124   :  { %2602 = vmatpush1.bf16.msra.mxu0 %v4043_v35  ;;  %2684 = vmatpush1.bf16.msra.mxu1 %v4046_v36 }
 0x125   :  { %2603 = vmatprep.subr.bf16.mxu0 %v4051_v37  ;;  %2685 = vmatprep.subr.bf16.mxu1 %v4054_v38 }
 0x128   :  { %2604 = vmatpush1.bf16.msra.mxu0 %v4049_v39  ;;  %2686 = vmatpush1.bf16.msra.mxu1 %v4052_v40 }
 0x129   :  { %2605 = vmatprep.subr.bf16.mxu0 %v4057_v41  ;;  %2687 = vmatprep.subr.bf16.mxu1 %v4060_v42 }
 0x12c   :  { %2606 = vmatpush1.bf16.msra.mxu0 %v4055_v43  ;;  %2688 = vmatpush1.bf16.msra.mxu1 %v4058_v44 }
 0x12d   :  { %2607 = vmatprep.subr.bf16.mxu0 %v4063_v45  ;;  %2689 = vmatprep.subr.bf16.mxu1 %v4066_v46 }
 0x130   :  { %2608 = vmatpush1.bf16.msra.mxu0 %v4061_v47  ;;  %2690 = vmatpush1.bf16.msra.mxu1 %v4064_v48 }
 0x131   :  { %2609 = vmatprep.subr.bf16.mxu0 %v4069_v49  ;;  %2691 = vmatprep.subr.bf16.mxu1 %v4072_v50 }
 0x134   :  { %2610 = vmatpush1.bf16.msra.mxu0 %v4067_v51  ;;  %2692 = vmatpush1.bf16.msra.mxu1 %v4070_v52 }
 0x135   :  { %2611 = vmatprep.subr.bf16.mxu0 %v4075_v53  ;;  %2693 = vmatprep.subr.bf16.mxu1 %v4078_v54 }
 0x138   :  { %2612 = vmatpush1.bf16.msra.mxu0 %v4073_v55  ;;  %2694 = vmatpush1.bf16.msra.mxu1 %v4076_v56 }
 0x139   :  { %2613 = vmatprep.subr.bf16.mxu0 %v4081_v57  ;;  %2695 = vmatprep.subr.bf16.mxu1 %v4084_v58 }
 0x13c   :  { %2614 = vmatpush1.bf16.msra.mxu0 %v4079_v59  ;;  %2696 = vmatpush1.bf16.msra.mxu1 %v4082_v60  ;;  %v4569_v60 = vstv %s3720_s0 }
 0x13d   :  { %2615 = vmatprep.subr.bf16.mxu0 %v4087_v61  ;;  %2697 = vmatprep.subr.bf16.mxu1 %v4090_v62 }
 0x140   :  { %2616 = vmatpush1.bf16.msra.mxu0 %v4085_v63  ;;  %2698 = vmatpush1.bf16.msra.mxu1 %v4088_v0 }
 0x141   :  { %2617 = vmatprep.subr.bf16.mxu0 %v4093_v1  ;;  %2699 = vmatprep.subr.bf16.mxu1 %v4096_v2 }
 0x144   :  { %2618 = vmatpush1.bf16.msra.mxu0 %v4091_v3  ;;  %2700 = vmatpush1.bf16.msra.mxu1 %v4094_v4 }
 0x145   :  { %2619 = vmatprep.subr.bf16.mxu0 %v4099_v5  ;;  %2701 = vmatprep.subr.bf16.mxu1 %v4102_v6 }
 0x148   :  { %2620 = vmatpush1.bf16.msra.mxu0 %v4097_v7  ;;  %2702 = vmatpush1.bf16.msra.mxu1 %v4100_v8 }
 0x149   :  { %2621 = vmatprep.subr.bf16.mxu0 %v4105_v9  ;;  %2703 = vmatprep.subr.bf16.mxu1 %v4108_v10 }
 0x14c   :  { %2622 = vmatpush1.bf16.msra.mxu0 %v4103_v11  ;;  %2704 = vmatpush1.bf16.msra.mxu1 %v4106_v12 }
 0x14d   :  { %2623 = vmatprep.subr.bf16.mxu0 %v4111_v13  ;;  %2705 = vmatprep.subr.bf16.mxu1 %v4114_v14 }
 0x150   :  { %2624 = vmatpush1.bf16.msra.mxu0 %v4109_v15  ;;  %2706 = vmatpush1.bf16.msra.mxu1 %v4112_v16 }
 0x151   :  { %2625 = vmatprep.subr.bf16.mxu0 %v4117_v17  ;;  %2707 = vmatprep.subr.bf16.mxu1 %v4120_v18 }
 0x154   :  { %2626 = vmatpush1.bf16.msra.mxu0 %v4115_v19  ;;  %2708 = vmatpush1.bf16.msra.mxu1 %v4118_v20 }
 0x155   :  { %2636 = vmatprep.subr.bf16.mxu0 %v4123_v21  ;;  %2718 = vmatprep.subr.bf16.mxu1 %v4126_v22 }
 0x1ea   :  { %v1475_v35 = vpop.f32.mrb[0].mxu0  ;;  %v1639_v36 = vpop.f32.mrb[0].mxu1 }
 0x1eb   :  { %v4537_v37 = vadd.f32 %v1475_v35, %v317_v30  ;;  %v4539_v38 = vadd.f32 %v1639_v36, %v325_v31  ;;  %v1477_v39 = vpop.f32.mrb[1].mxu0  ;;  %v1641_v40 = vpop.f32.mrb[1].mxu1 }
 0x1ec   :  { %v4545_v42 = vadd.f32 %v1477_v39, %v321_v32  ;;  %v4547_v43 = vadd.f32 %v1641_v40, %v329_v33  ;;  %v1479_v44 = vpop.f32.mrb[2].mxu0  ;;  %v1643_v45 = vpop.f32.mrb[2].mxu1 }
 0x1ed   :  { %v1646_v46 = vmax.f32 %v4537_v37, 0.0  ;;  %v1648_v47 = vmax.f32 %v4539_v38, 0.0  ;;  %v1480_v48 = vpop.f32.mrb[3].mxu0  ;;  %v1644_v49 = vpop.f32.mrb[3].mxu1 }
 0x1ee   :  { %v1647_v50 = vmax.f32 %v4545_v42, 0.0  ;;  %v1649_v51 = vmax.f32 %v4547_v43, 0.0 }
 0x1ef   :  { %v1658_v52 = vsel %vm4541_vm1, %v1646_v46, 0.0  ;;  %v1660_v53 = vsel %vm4541_vm1, %v1648_v47, 0.0 }
 0x1f0   :  { %v1662_v54 = vrot.slane %v1658_v52, 4  ;;  %v1691_v55 = vmul.f32 %v1658_v52, %v1658_v52  ;;  %v1674_v56 = vrot.slane %v1660_v53, 4  ;;  %v1693_v57 = vmul.f32 %v1660_v53, %v1660_v53 }
 0x1f1   :  { %v1659_v58 = vsel %vm4541_vm1, %v1647_v50, 0.0  ;;  %v1661_v59 = vsel %vm4541_vm1, %v1649_v51, 0.0 }
 0x1f2   :  { %v1663_v61 = vadd.f32 %v1662_v54, %v1658_v52  ;;  %v1695_v62 = vrot.slane %v1691_v55, 4  ;;  %v1675_v63 = vadd.f32 %v1674_v56, %v1660_v53  ;;  %v1707_v0 = vrot.slane %v1693_v57, 4 }
 0x1f3   :  { %v1668_v1 = vrot.slane %v1659_v58, 4  ;;  %v1692_v2 = vmul.f32 %v1659_v58, %v1659_v58  ;;  %v1680_v3 = vrot.slane %v1661_v59, 4  ;;  %v1694_v4 = vmul.f32 %v1661_v59, %v1661_v59 }
 0x1f4   :  { %v1664_v5 = vrot.slane %v1663_v61, 2  ;;  %v1696_v6 = vadd.f32 %v1695_v62, %v1691_v55  ;;  %v1676_v7 = vrot.slane %v1675_v63, 2  ;;  %v1708_v8 = vadd.f32 %v1707_v0, %v1693_v57 }
 0x1f5   :  { %v1669_v9 = vadd.f32 %v1668_v1, %v1659_v58  ;;  %v1701_v10 = vrot.slane %v1692_v2, 4  ;;  %v1681_v11 = vadd.f32 %v1680_v3, %v1661_v59  ;;  %v1713_v12 = vrot.slane %v1694_v4, 4 }
 0x1f6   :  { %v1665_v13 = vadd.f32 %v1664_v5, %v1663_v61  ;;  %v1697_v14 = vrot.slane %v1696_v6, 2  ;;  %v1677_v15 = vadd.f32 %v1676_v7, %v1675_v63  ;;  %v1709_v16 = vrot.slane %v1708_v8, 2 }
 0x1f7   :  { %v1670_v17 = vrot.slane %v1669_v9, 2  ;;  %v1702_v18 = vadd.f32 %v1701_v10, %v1692_v2  ;;  %v1682_v19 = vrot.slane %v1681_v11, 2  ;;  %v1714_v20 = vadd.f32 %v1713_v12, %v1694_v4 }
 0x1f8   :  { %v1666_v21 = vrot.slane %v1665_v13, 1  ;;  %v1698_v22 = vadd.f32 %v1697_v14, %v1696_v6  ;;  %v1678_v23 = vrot.slane %v1677_v15, 1  ;;  %v1710_v24 = vadd.f32 %v1709_v16, %v1708_v8 }
 0x1f9   :  { %v1671_v27 = vadd.f32 %v1670_v17, %v1669_v9  ;;  %v1703_v30 = vrot.slane %v1702_v18, 2  ;;  %v1683_v31 = vadd.f32 %v1682_v19, %v1681_v11  ;;  %v1715_v32 = vrot.slane %v1714_v20, 2  ;;  %v1654_v19 = vld [vmem:[%s4689_s4] sm:$0xf] }
 0x1fa   :  { %v1667_v33 = vadd.f32 %v1666_v21, %v1665_v13  ;;  %v1699_v34 = vrot.slane %v1698_v22, 1  ;;  %v1679_v35 = vadd.f32 %v1678_v23, %v1677_v15  ;;  %v1711_v36 = vrot.slane %v1710_v24, 1 }
 0x1fb   :  { %v1672_v39 = vrot.slane %v1671_v27, 1  ;;  %v1704_v40 = vadd.f32 %v1703_v30, %v1702_v18  ;;  %v1684_v44 = vrot.slane %v1683_v31, 1  ;;  %v1716_v45 = vadd.f32 %v1715_v32, %v1714_v20  ;;  %v1655_v20 = vld [vmem:[%s4690_s5] sm:$0xf] }
 0x1fc   :  { %v1700_v48 = vadd.f32 %v1699_v34, %v1698_v22  ;;  %v1712_v49 = vadd.f32 %v1711_v36, %v1710_v24  ;;  %v1687_v52 = vmul.f32 %v4569_v60, %v1667_v33  ;;  %v1689_v53 = vmul.f32 %v4569_v60, %v1679_v35 }
 0x1fd   :  { %v1673_v54 = vadd.f32 %v1672_v39, %v1671_v27  ;;  %v1705_v55 = vrot.slane %v1704_v40, 1  ;;  %v1685_v56 = vadd.f32 %v1684_v44, %v1683_v31  ;;  %v1717_v57 = vrot.slane %v1716_v45, 1 }
 0x1fe   :  { %v1719_v58 = vmul.f32 %v1700_v48, %v4569_v60  ;;  %v1723_v59 = vmul.f32 %v1687_v52, %v1687_v52  ;;  %v1721_v61 = vmul.f32 %v1712_v49, %v4569_v60  ;;  %v1725_v3 = vmul.f32 %v1689_v53, %v1689_v53 }
 0x1ff   :  { %v1706_v62 = vadd.f32 %v1705_v55, %v1704_v40  ;;  %v1718_v63 = vadd.f32 %v1717_v57, %v1716_v45  ;;  %v1688_v0 = vmul.f32 %v4569_v60, %v1673_v54  ;;  %v1690_v1 = vmul.f32 %v4569_v60, %v1685_v56  ;;  %v4124_v56 = vld [vmem:[#allocation8 + $0x208] ss:$16 sps:$4 sm:$0xff]  }
 0x200   :  { %v1727_v2 = vsub.f32 %v1719_v58, %v1723_v59  ;;  %v1729_v9 = vsub.f32 %v1721_v61, %v1725_v3  ;;  %v1735_v21 = vsub.f32 %v1646_v46, %v1687_v52  ;;  %v1755_v22 = vrot.slane %v1654_v19, %v4519_v25  ;;  %v4129_v58 = vld [vmem:[#allocation8 + $0x224] ss:$16 sps:$4 sm:$0xff]   ;;  %v4132_v59 = vld [vmem:[#allocation8 + $0x22c] ss:$16 sps:$4 sm:$0xff]   ;;  %v4136_v3 = vld [vmem:[#allocation8 + $0x248] ss:$16 sps:$4 sm:$0xff]  }
 0x201   :  { %v1720_v4 = vmul.f32 %v1706_v62, %v4569_v60  ;;  %v1724_v5 = vmul.f32 %v1688_v0, %v1688_v0  ;;  %v1722_v6 = vmul.f32 %v1718_v63, %v4569_v60  ;;  %v1726_v8 = vmul.f32 %v1690_v1, %v1690_v1  ;;  %v4127_v62 = vld [vmem:[#allocation8 + $0x220] ss:$16 sps:$4 sm:$0xff]   ;;  %v4130_v63 = vld [vmem:[#allocation8 + $0x228] ss:$16 sps:$4 sm:$0xff]  }
 0x202   :  { %v1731_v7 = vmax.f32 %v1727_v2, 0.0  ;;  %v1733_v13 = vmax.f32 %v1729_v9, 0.0  ;;  %v1737_v27 = vsub.f32 %v1648_v47, %v1689_v53  ;;  %v1763_v30 = vrot.slane %v1654_v19, %v4521_v26  ;;  %v4133_v2 = vld [vmem:[#allocation8 + $0x240] ss:$16 sps:$4 sm:$0xff]   ;;  %v4150_v9 = vld [vmem:[#allocation8 + $0x28c] ss:$16 sps:$4 sm:$0xff]  }
 0x203   :  { %v1728_v10 = vsub.f32 %v1720_v4, %v1724_v5  ;;  %v1730_v12 = vsub.f32 %v1722_v6, %v1726_v8  ;;  %v1736_v32 = vsub.f32 %v1647_v50, %v1688_v0  ;;  %v1759_v33 = vrot.slane %v1654_v19, %v4526_v28  ;;  %v4135_v0 = vld [vmem:[#allocation8 + $0x244] ss:$16 sps:$4 sm:$0xff]   ;;  %v4144_v5 = vld [vmem:[#allocation8 + $0x26c] ss:$16 sps:$4 sm:$0xff]   ;;  %v4139_v6 = vld [vmem:[#allocation8 + $0x260] ss:$16 sps:$4 sm:$0xff]  }
 0x204   :  { %v1739_v11 = vadd.f32 1e-05, %v1731_v7  ;;  %v1741_v16 = vadd.f32 1e-05, %v1733_v13  ;;  %v1780_v34 = vrot.slane %v1655_v20, %v4519_v25  ;;  %v1767_v37 = vrot.slane %v1654_v19, %v4528_v29  ;;  %v4141_v4 = vld [vmem:[#allocation8 + $0x264] ss:$16 sps:$4 sm:$0xff]  }
 0x205   :  { %v1732_v14 = vmax.f32 %v1728_v10, 0.0  ;;  %v1734_v15 = vmax.f32 %v1730_v12, 0.0  ;;  %v1738_v36 = vsub.f32 %v1649_v51, %v1690_v1  ;;  %v1788_v38 = vrot.slane %v1655_v20, %v4521_v26  ;;  %v4121_v51 = vld [vmem:[#allocation8 + $0x200] ss:$16 sps:$4 sm:$0xff]   ;;  %v4138_v1 = vld [vmem:[#allocation8 + $0x24c] ss:$16 sps:$4 sm:$0xff]  }
 0x206   :  { %4251 = vrsqrt.f32 %v1739_v11  ;;  %v1784_v44 = vrot.slane %v1655_v20, %v4526_v28  ;;  %v1792_v50 = vrot.slane %v1655_v20, %v4528_v29  ;;  %v4142_v7 = vld [vmem:[#allocation8 + $0x268] ss:$16 sps:$4 sm:$0xff]   ;;  %v4147_v8 = vld [vmem:[#allocation8 + $0x284] ss:$16 sps:$4 sm:$0xff]   ;;  %v4145_v10 = vld [vmem:[#allocation8 + $0x280] ss:$16 sps:$4 sm:$0xff]  }
 0x207   :  { %v1740_v17 = vadd.f32 1e-05, %v1732_v14  ;;  %v1742_v18 = vadd.f32 1e-05, %v1734_v15  ;;  %4253 = vrsqrt.f32 %v1741_v16  ;;  %v4148_v11 = vld [vmem:[#allocation8 + $0x288] ss:$16 sps:$4 sm:$0xff]  }
 0x208   :  { %v4153_v12 = vld [vmem:[#allocation8 + $0x2a4] ss:$16 sps:$4 sm:$0xff]   ;;  %v4156_v13 = vld [vmem:[#allocation8 + $0x2ac] ss:$16 sps:$4 sm:$0xff]   ;;  %v4151_v14 = vld [vmem:[#allocation8 + $0x2a0] ss:$16 sps:$4 sm:$0xff]  }
 0x209   :  { %4255 = vrsqrt.f32 %v1740_v17  ;;  %v4154_v15 = vld [vmem:[#allocation8 + $0x2a8] ss:$16 sps:$4 sm:$0xff]   ;;  %v4159_v16 = vld [vmem:[#allocation8 + $0x2c4] ss:$16 sps:$4 sm:$0xff]   ;;  %v4162_v17 = vld [vmem:[#allocation8 + $0x2cc] ss:$16 sps:$4 sm:$0xff]  }
 0x20a   :  { %4257 = vrsqrt.f32 %v1742_v18  ;;  %v4157_v18 = vld [vmem:[#allocation8 + $0x2c0] ss:$16 sps:$4 sm:$0xff]   ;;  %v4160_v19 = vld [vmem:[#allocation8 + $0x2c8] ss:$16 sps:$4 sm:$0xff]   ;;  %v4165_v20 = vld [vmem:[#allocation8 + $0x2e4] ss:$16 sps:$4 sm:$0xff]  }
 0x210   :  { %v4252_v23 = vpop.eup %4251 }
 0x211   :  { %v1747_v24 = vmul.f32 %v4252_v23, %v1735_v21  ;;  %v4254_v31 = vpop.eup %4253  ;;  %v4168_v21 = vld [vmem:[#allocation8 + $0x2ec] ss:$16 sps:$4 sm:$0xff]   ;;  %v4166_v23 = vld [vmem:[#allocation8 + $0x2e8] ss:$16 sps:$4 sm:$0xff]  }
 0x212   :  { %v1749_v39 = vmul.f32 %v4254_v31, %v1737_v27  ;;  %v4174_v27 = vld [vmem:[#allocation8 + $0x30c] ss:$16 sps:$4 sm:$0xff]   ;;  %v4172_v31 = vld [vmem:[#allocation8 + $0x308] ss:$16 sps:$4 sm:$0xff]  }
 0x213   :  { %v4256_v46 = vpop.eup %4255  ;;  %v1772_v35 = vmul.f32 %v1755_v22, %v1747_v24  ;;  %v4163_v22 = vld [vmem:[#allocation8 + $0x2e0] ss:$16 sps:$4 sm:$0xff]   ;;  %v4171_v24 = vld [vmem:[#allocation8 + $0x304] ss:$16 sps:$4 sm:$0xff]  }
 0x214   :  { %v4258_v47 = vpop.eup %4257  ;;  %v1748_v40 = vmul.f32 %v4256_v46, %v1736_v32  ;;  %v1774_v45 = vmul.f32 %v1763_v30, %v1749_v39  ;;  %v4169_v30 = vld [vmem:[#allocation8 + $0x300] ss:$16 sps:$4 sm:$0xff]   ;;  %v4177_v32 = vld [vmem:[#allocation8 + $0x324] ss:$16 sps:$4 sm:$0xff]   ;;  %v4184_v39 = vld [vmem:[#allocation8 + $0x348] ss:$16 sps:$4 sm:$0xff]  }
 0x215   :  { %v1750_v42 = vmul.f32 %v4258_v47, %v1738_v36  ;;  %v1797_v49 = vadd.f32 %v1780_v34, %v1772_v35  ;;  %v4175_v34 = vld [vmem:[#allocation8 + $0x320] ss:$16 sps:$4 sm:$0xff]   ;;  %v4183_v46 = vld [vmem:[#allocation8 + $0x344] ss:$16 sps:$4 sm:$0xff]   ;;  %v4186_v35 = vld [vmem:[#allocation8 + $0x34c] ss:$16 sps:$4 sm:$0xff]  }
 0x216   :  { %v1773_v48 = vmul.f32 %v1759_v33, %v1748_v40  ;;  %v4601_v53 = vadd.f32 %v1788_v38, %v1774_v45  ;;  %v4180_v33 = vld [vmem:[#allocation8 + $0x32c] ss:$16 sps:$4 sm:$0xff]   ;;  %v4181_v36 = vld [vmem:[#allocation8 + $0x340] ss:$16 sps:$4 sm:$0xff]   ;;  %v4189_v38 = vld [vmem:[#allocation8 + $0x364] ss:$16 sps:$4 sm:$0xff]  }
 0x217   :  { %v1775_v52 = vmul.f32 %v1767_v37, %v1750_v42  ;;  %v1801_v57 = vpack.c.bf16 %v1797_v49, %v1797_v49  ;;  %v4178_v37 = vld [vmem:[#allocation8 + $0x328] ss:$16 sps:$4 sm:$0xff]   ;;  %v4192_v47 = vld [vmem:[#allocation8 + $0x36c] ss:$16 sps:$4 sm:$0xff]   ;;  %v4187_v40 = vld [vmem:[#allocation8 + $0x360] ss:$16 sps:$4 sm:$0xff]  }
 0x218   :  { %v1798_v54 = vadd.f32 %v1784_v44, %v1773_v48  ;;  %v4190_v44 = vld [vmem:[#allocation8 + $0x368] ss:$16 sps:$4 sm:$0xff]   ;;  %v4195_v42 = vld [vmem:[#allocation8 + $0x384] ss:$16 sps:$4 sm:$0xff]   ;;  %v4193_v45 = vld [vmem:[#allocation8 + $0x380] ss:$16 sps:$4 sm:$0xff]  }
 0x219   :  { %v1800_v55 = vadd.f32 %v1792_v50, %v1775_v52  ;;  %v4198_v50 = vld [vmem:[#allocation8 + $0x38c] ss:$16 sps:$4 sm:$0xff]   ;;  %v4196_v48 = vld [vmem:[#allocation8 + $0x388] ss:$16 sps:$4 sm:$0xff]   ;;  %v4201_v49 = vld [vmem:[#allocation8 + $0x3a4] ss:$16 sps:$4 sm:$0xff]  }
 0x21a   :  { %v1802_v43 = vpack.c.bf16 %v1798_v54, %v1798_v54  ;;  %v4204_v52 = vld [vmem:[#allocation8 + $0x3ac] ss:$16 sps:$4 sm:$0xff]   ;;  %v4199_v54 = vld [vmem:[#allocation8 + $0x3a0] ss:$16 sps:$4 sm:$0xff]  }
 0x21b   :  { %v1804_v61 = vpack.c.bf16 %v1800_v55, %v1800_v55  ;;  %v4202_v55 = vld [vmem:[#allocation8 + $0x3a8] ss:$16 sps:$4 sm:$0xff]  }
 0x21c   :  { %2627 = vmatprep.mubr.bf16.mxu0 %v1802_v43  ;;  %2709 = vmatprep.mubr.bf16.mxu1 %v1802_v43  ;;  %v4207_v43 = vld [vmem:[#allocation8 + $0x3c4] ss:$16 sps:$4 sm:$0xff]  }
 0x21d   :  { %2628 = vmatmul.mubr.bf16.vlgmr.msra.gmra.mrb[4].mxu0 %v1801_v57  ;;  %2710 = vmatmul.mubr.bf16.vlgmr.msra.gmra.mrb[4].mxu1 %v1801_v57  ;;  %v4208_v57 = vld [vmem:[#allocation8 + $0x3c8] ss:$16 sps:$4 sm:$0xff]  }
 0x21e   :  { %2637 = vmatpush1.bf16.msra.mxu0 %v4121_v51  ;;  %2719 = vmatpush1.bf16.msra.mxu1 %v4124_v56  ;;  %v4210_v51 = vld [vmem:[#allocation8 + $0x3cc] ss:$16 sps:$4 sm:$0xff]   ;;  %v4205_v56 = vld [vmem:[#allocation8 + $0x3c0] ss:$16 sps:$4 sm:$0xff]  }
 0x21f   :  { %2668 = vmatprep.mubr.bf16.mxu0 %v1804_v61  ;;  %2750 = vmatprep.mubr.bf16.mxu1 %v1804_v61  ;;  %v4211_v61 = vld [vmem:[#allocation8 + $0x3e0] ss:$16 sps:$4 sm:$0xff]  }
 0x220   :  { %2638 = vmatprep.subr.bf16.mxu0 %v4129_v58  ;;  %2720 = vmatprep.subr.bf16.mxu1 %v4132_v59  ;;  %v4213_v58 = vld [vmem:[#allocation8 + $0x3e4] ss:$16 sps:$4 sm:$0xff]   ;;  %v4216_v59 = vld [vmem:[#allocation8 + $0x3ec] ss:$16 sps:$4 sm:$0xff]  }
 0x222   :  { %2639 = vmatpush1.bf16.msra.mxu0 %v4127_v62  ;;  %2721 = vmatpush1.bf16.msra.mxu1 %v4130_v63  ;;  %v4214_v62 = vld [vmem:[#allocation8 + $0x3e8] ss:$16 sps:$4 sm:$0xff]   ;;  %v1803_v63 = vpack.c.bf16 %v4601_v53, %v4601_v53  ;;  %v4226_v53 = vld [vmem:[#allocation9 + $0xd0] sm:$0xff]  }
 0x223   :  { %2640 = vmatprep.subr.bf16.mxu0 %v4135_v0  ;;  %2722 = vmatprep.subr.bf16.mxu1 %v4138_v1  ;;  %v4217_v0 = vld [vmem:[#allocation9 + $0x40] sm:$0xff]  }
 0x224   :  { %v4218_v1 = vld [vmem:[#allocation9 + $0xc0] sm:$0xff]  }
 0x226   :  { %2641 = vmatpush1.bf16.msra.mxu0 %v4133_v2  ;;  %2723 = vmatpush1.bf16.msra.mxu1 %v4136_v3  ;;  %v4219_v2 = vld [vmem:[#allocation9] sm:$0xff]  }
 0x227   :  { %2642 = vmatprep.subr.bf16.mxu0 %v4141_v4  ;;  %2724 = vmatprep.subr.bf16.mxu1 %v4144_v5  ;;  %v4220_v3 = vld [vmem:[#allocation9 + $0x80] sm:$0xff]   ;;  %v4221_v4 = vld [vmem:[#allocation9 + $0x48] sm:$0xff]  }
 0x228   :  { %v4222_v5 = vld [vmem:[#allocation9 + $0xc8] sm:$0xff]  }
 0x22a   :  { %2643 = vmatpush1.bf16.msra.mxu0 %v4139_v6  ;;  %2725 = vmatpush1.bf16.msra.mxu1 %v4142_v7  ;;  %v4223_v6 = vld [vmem:[#allocation9 + $0x8] sm:$0xff]  }
 0x22b   :  { %2644 = vmatprep.subr.bf16.mxu0 %v4147_v8  ;;  %2726 = vmatprep.subr.bf16.mxu1 %v4150_v9  ;;  %v4224_v7 = vld [vmem:[#allocation9 + $0x88] sm:$0xff]   ;;  %v4225_v8 = vld [vmem:[#allocation9 + $0x50] sm:$0xff]  }
 0x22c   :  { %v4227_v9 = vld [vmem:[#allocation9 + $0x10] sm:$0xff]  }
 0x22e   :  { %2645 = vmatpush1.bf16.msra.mxu0 %v4145_v10  ;;  %2727 = vmatpush1.bf16.msra.mxu1 %v4148_v11  ;;  %v4228_v10 = vld [vmem:[#allocation9 + $0x90] sm:$0xff]   ;;  %v4229_v11 = vld [vmem:[#allocation9 + $0x58] sm:$0xff]  }
 0x22f   :  { %2646 = vmatprep.subr.bf16.mxu0 %v4153_v12  ;;  %2728 = vmatprep.subr.bf16.mxu1 %v4156_v13  ;;  %v4230_v12 = vld [vmem:[#allocation9 + $0xd8] sm:$0xff]  }
 0x230   :  { %v4231_v13 = vld [vmem:[#allocation9 + $0x18] sm:$0xff]  }
 0x232   :  { %2647 = vmatpush1.bf16.msra.mxu0 %v4151_v14  ;;  %2729 = vmatpush1.bf16.msra.mxu1 %v4154_v15  ;;  %v4232_v14 = vld [vmem:[#allocation9 + $0x98] sm:$0xff]   ;;  %v4233_v15 = vld [vmem:[#allocation9 + $0x60] sm:$0xff]  }
 0x233   :  { %2648 = vmatprep.subr.bf16.mxu0 %v4159_v16  ;;  %2730 = vmatprep.subr.bf16.mxu1 %v4162_v17  ;;  %v4234_v16 = vld [vmem:[#allocation9 + $0xe0] sm:$0xff]  }
 0x234   :  { %v4235_v17 = vld [vmem:[#allocation9 + $0x20] sm:$0xff]  }
 0x236   :  { %2649 = vmatpush1.bf16.msra.mxu0 %v4157_v18  ;;  %2731 = vmatpush1.bf16.msra.mxu1 %v4160_v19  ;;  %v4236_v18 = vld [vmem:[#allocation9 + $0xa0] sm:$0xff]   ;;  %v4237_v19 = vld [vmem:[#allocation9 + $0x68] sm:$0xff]  }
 0x237   :  { %2650 = vmatprep.subr.bf16.mxu0 %v4165_v20  ;;  %2732 = vmatprep.subr.bf16.mxu1 %v4168_v21  ;;  %v4238_v20 = vld [vmem:[#allocation9 + $0xe8] sm:$0xff]  }
 0x238   :  { %v4239_v21 = vld [vmem:[#allocation9 + $0x28] sm:$0xff]  }
 0x23a   :  { %2651 = vmatpush1.bf16.msra.mxu0 %v4163_v22  ;;  %2733 = vmatpush1.bf16.msra.mxu1 %v4166_v23  ;;  %v4240_v22 = vld [vmem:[#allocation9 + $0xa8] sm:$0xff]   ;;  %v4241_v23 = vld [vmem:[#allocation9 + $0x70] sm:$0xff]  }
 0x23b   :  { %2652 = vmatprep.subr.bf16.mxu0 %v4171_v24  ;;  %2734 = vmatprep.subr.bf16.mxu1 %v4174_v27  ;;  %v4242_v24 = vld [vmem:[#allocation9 + $0xf0] sm:$0xff]  }
 0x23c   :  { %v4243_v27 = vld [vmem:[#allocation9 + $0x30] sm:$0xff]  }
 0x23e   :  { %2653 = vmatpush1.bf16.msra.mxu0 %v4169_v30  ;;  %2735 = vmatpush1.bf16.msra.mxu1 %v4172_v31  ;;  %v4244_v30 = vld [vmem:[#allocation9 + $0xb0] sm:$0xff]   ;;  %v4245_v31 = vld [vmem:[#allocation9 + $0x78] sm:$0xff]  }
 0x23f   :  { %2654 = vmatprep.subr.bf16.mxu0 %v4177_v32  ;;  %2736 = vmatprep.subr.bf16.mxu1 %v4180_v33  ;;  %v4246_v32 = vld [vmem:[#allocation9 + $0xf8] sm:$0xff]  }
 0x240   :  { %v4247_v33 = vld [vmem:[#allocation9 + $0x38] sm:$0xff]  }
 0x242   :  { %2655 = vmatpush1.bf16.msra.mxu0 %v4175_v34  ;;  %2737 = vmatpush1.bf16.msra.mxu1 %v4178_v37  ;;  %v4248_v34 = vld [vmem:[#allocation9 + $0xb8] sm:$0xff]   ;;  %v1933_v37 = vld [vmem:[%s4692_s7] sm:$0xf] }
 0x243   :  { %2656 = vmatprep.subr.bf16.mxu0 %v4183_v46  ;;  %2738 = vmatprep.subr.bf16.mxu1 %v4186_v35  ;;  %v1938_v46 = vrot.slane %v1933_v37, %v4519_v25  ;;  %v1946_v35 = vrot.slane %v1933_v37, %v4521_v26 }
 0x246   :  { %2657 = vmatpush1.bf16.msra.mxu0 %v4181_v36  ;;  %2739 = vmatpush1.bf16.msra.mxu1 %v4184_v39  ;;  %v1942_v36 = vrot.slane %v1933_v37, %v4526_v28  ;;  %v1950_v39 = vrot.slane %v1933_v37, %v4528_v29 }
 0x247   :  { %2658 = vmatprep.subr.bf16.mxu0 %v4189_v38  ;;  %2740 = vmatprep.subr.bf16.mxu1 %v4192_v47 }
 0x24a   :  { %2659 = vmatpush1.bf16.msra.mxu0 %v4187_v40  ;;  %2741 = vmatpush1.bf16.msra.mxu1 %v4190_v44 }
 0x24b   :  { %2660 = vmatprep.subr.bf16.mxu0 %v4195_v42  ;;  %2742 = vmatprep.subr.bf16.mxu1 %v4198_v50 }
 0x24e   :  { %2661 = vmatpush1.bf16.msra.mxu0 %v4193_v45  ;;  %2743 = vmatpush1.bf16.msra.mxu1 %v4196_v48 }
 0x24f   :  { %2662 = vmatprep.subr.bf16.mxu0 %v4201_v49  ;;  %2744 = vmatprep.subr.bf16.mxu1 %v4204_v52 }
 0x252   :  { %2663 = vmatpush1.bf16.msra.mxu0 %v4199_v54  ;;  %2745 = vmatpush1.bf16.msra.mxu1 %v4202_v55 }
 0x253   :  { %2664 = vmatprep.subr.bf16.mxu0 %v4207_v43  ;;  %2746 = vmatprep.subr.bf16.mxu1 %v4210_v51 }
 0x256   :  { %2665 = vmatpush1.bf16.msra.mxu0 %v4205_v56  ;;  %2747 = vmatpush1.bf16.msra.mxu1 %v4208_v57 }
 0x257   :  { %2666 = vmatprep.subr.bf16.mxu0 %v4213_v58  ;;  %2748 = vmatprep.subr.bf16.mxu1 %v4216_v59 }
 0x25a   :  { %2667 = vmatpush1.bf16.msra.mxu0 %v4211_v61  ;;  %2749 = vmatpush1.bf16.msra.mxu1 %v4214_v62 }
 0x25b   :  { %3635 = vmatprep.subr.bf16.mxu0 %v4217_v0  ;;  %3657 = vmatprep.subr.bf16.mxu1 %v4218_v1 }
 0x25d   :  { %2669 = vmatmul.mubr.bf16.vlgmr.msra.gmra.mrb[4].mxu0 %v1803_v63  ;;  %2751 = vmatmul.mubr.bf16.vlgmr.msra.gmra.mrb[4].mxu1 %v1803_v63 }
 0x25e   :  { %3636 = vmatpush3.bf16.msra.mxu0 %v4219_v2  ;;  %3658 = vmatpush3.bf16.msra.mxu1 %v4220_v3 }
 0x25f   :  { %3637 = vmatprep.subr.bf16.mxu0 %v4221_v4  ;;  %3659 = vmatprep.subr.bf16.mxu1 %v4222_v5 }
 0x262   :  { %3638 = vmatpush3.bf16.msra.mxu0 %v4223_v6  ;;  %3660 = vmatpush3.bf16.msra.mxu1 %v4224_v7 }
 0x263   :  { %3639 = vmatprep.subr.bf16.mxu0 %v4225_v8  ;;  %3661 = vmatprep.subr.bf16.mxu1 %v4226_v53 }
 0x266   :  { %3640 = vmatpush3.bf16.msra.mxu0 %v4227_v9  ;;  %3662 = vmatpush3.bf16.msra.mxu1 %v4228_v10 }
 0x267   :  { %3641 = vmatprep.subr.bf16.mxu0 %v4229_v11  ;;  %3663 = vmatprep.subr.bf16.mxu1 %v4230_v12 }
 0x26a   :  { %3642 = vmatpush3.bf16.msra.mxu0 %v4231_v13  ;;  %3664 = vmatpush3.bf16.msra.mxu1 %v4232_v14 }
 0x26b   :  { %3643 = vmatprep.subr.bf16.mxu0 %v4233_v15  ;;  %3665 = vmatprep.subr.bf16.mxu1 %v4234_v16 }
 0x26e   :  { %3644 = vmatpush3.bf16.msra.mxu0 %v4235_v17  ;;  %3666 = vmatpush3.bf16.msra.mxu1 %v4236_v18 }
 0x26f   :  { %3645 = vmatprep.subr.bf16.mxu0 %v4237_v19  ;;  %3667 = vmatprep.subr.bf16.mxu1 %v4238_v20 }
 0x272   :  { %3646 = vmatpush3.bf16.msra.mxu0 %v4239_v21  ;;  %3668 = vmatpush3.bf16.msra.mxu1 %v4240_v22 }
 0x273   :  { %3647 = vmatprep.subr.bf16.mxu0 %v4241_v23  ;;  %3669 = vmatprep.subr.bf16.mxu1 %v4242_v24 }
 0x276   :  { %3648 = vmatpush3.bf16.msra.mxu0 %v4243_v27  ;;  %3670 = vmatpush3.bf16.msra.mxu1 %v4244_v30 }
 0x277   :  { %3649 = vmatprep.subr.bf16.mxu0 %v4245_v31  ;;  %3671 = vmatprep.subr.bf16.mxu1 %v4246_v32 }
 0x27a   :  { %3650 = vmatpush3.bf16.msra.mxu0 %v4247_v33  ;;  %3672 = vmatpush3.bf16.msra.mxu1 %v4248_v34 }
 0x330   :  { %v2670_v38 = vpop.f32.mrb[4].mxu0  ;;  %v2752_v47 = vpop.f32.mrb[4].mxu1 }
 0x331   :  { %v4612_v40 = vadd.f32 %v2670_v38, %v1938_v46  ;;  %v4614_v44 = vadd.f32 %v2752_v47, %v1946_v35  ;;  %v2672_v42 = vpop.f32.mrb[5].mxu0  ;;  %v2754_v50 = vpop.f32.mrb[5].mxu1 }
 0x332   :  { %v4616_v45 = vadd.f32 %v2672_v42, %v1942_v36  ;;  %v4618_v48 = vadd.f32 %v2754_v50, %v1950_v39  ;;  %v2674_v49 = vpop.f32.mrb[6].mxu0  ;;  %v2756_v52 = vpop.f32.mrb[6].mxu1 }
 0x333   :  { %v2759_v54 = vmax.f32 %v4612_v40, 0.0  ;;  %v2761_v55 = vmax.f32 %v4614_v44, 0.0  ;;  %v2675_v43 = vpop.f32.mrb[7].mxu0  ;;  %v2757_v51 = vpop.f32.mrb[7].mxu1 }
 0x334   :  { %v2760_v56 = vmax.f32 %v4616_v45, 0.0  ;;  %v2762_v57 = vmax.f32 %v4618_v48, 0.0 }
 0x335   :  { %v2765_v58 = vsel %vm4541_vm1, %v2759_v54, 0.0  ;;  %v2767_v59 = vsel %vm4541_vm1, %v2761_v55, 0.0 }
 0x336   :  { %v2769_v61 = vrot.slane %v2765_v58, 4  ;;  %v2797_v62 = vmul.f32 %v2765_v58, %v2765_v58  ;;  %v2781_v63 = vrot.slane %v2767_v59, 4  ;;  %v2799_v0 = vmul.f32 %v2767_v59, %v2767_v59 }
 0x337   :  { %v2766_v1 = vsel %vm4541_vm1, %v2760_v56, 0.0  ;;  %v2768_v2 = vsel %vm4541_vm1, %v2762_v57, 0.0 }
 0x338   :  { %v2770_v3 = vadd.f32 %v2769_v61, %v2765_v58  ;;  %v2801_v4 = vrot.slane %v2797_v62, 4  ;;  %v2782_v5 = vadd.f32 %v2781_v63, %v2767_v59  ;;  %v2813_v6 = vrot.slane %v2799_v0, 4 }
 0x339   :  { %v2775_v7 = vrot.slane %v2766_v1, 4  ;;  %v2798_v8 = vmul.f32 %v2766_v1, %v2766_v1  ;;  %v2787_v53 = vrot.slane %v2768_v2, 4  ;;  %v2800_v9 = vmul.f32 %v2768_v2, %v2768_v2 }
 0x33a   :  { %v2771_v10 = vrot.slane %v2770_v3, 2  ;;  %v2802_v11 = vadd.f32 %v2801_v4, %v2797_v62  ;;  %v2783_v12 = vrot.slane %v2782_v5, 2  ;;  %v2814_v13 = vadd.f32 %v2813_v6, %v2799_v0 }
 0x33b   :  { %v2776_v14 = vadd.f32 %v2775_v7, %v2766_v1  ;;  %v2807_v15 = vrot.slane %v2798_v8, 4  ;;  %v2788_v16 = vadd.f32 %v2787_v53, %v2768_v2  ;;  %v2819_v17 = vrot.slane %v2800_v9, 4 }
 0x33c   :  { %v2772_v18 = vadd.f32 %v2771_v10, %v2770_v3  ;;  %v2803_v19 = vrot.slane %v2802_v11, 2  ;;  %v2784_v41 = vadd.f32 %v2783_v12, %v2782_v5  ;;  %v2815_v20 = vrot.slane %v2814_v13, 2 }
 0x33d   :  { %v2777_v21 = vrot.slane %v2776_v14, 2  ;;  %v2808_v22 = vadd.f32 %v2807_v15, %v2798_v8  ;;  %v2789_v23 = vrot.slane %v2788_v16, 2  ;;  %v2820_v24 = vadd.f32 %v2819_v17, %v2800_v9 }
 0x33e   :  { %v2773_v27 = vrot.slane %v2772_v18, 1  ;;  %v2804_v30 = vadd.f32 %v2803_v19, %v2802_v11  ;;  %v2785_v31 = vrot.slane %v2784_v41, 1  ;;  %v2816_v32 = vadd.f32 %v2815_v20, %v2814_v13 }
 0x33f   :  { %v2778_v33 = vadd.f32 %v2777_v21, %v2776_v14  ;;  %v2809_v34 = vrot.slane %v2808_v22, 2  ;;  %v2790_v37 = vadd.f32 %v2789_v23, %v2788_v16  ;;  %v2821_v46 = vrot.slane %v2820_v24, 2 }
 0x340   :  { %v2774_v35 = vadd.f32 %v2773_v27, %v2772_v18  ;;  %v2805_v36 = vrot.slane %v2804_v30, 1  ;;  %v2786_v39 = vadd.f32 %v2785_v31, %v2784_v41  ;;  %v2817_v38 = vrot.slane %v2816_v32, 1  ;;  %v2764_v31 = vld [vmem:[%s4694_s9] sm:$0xf] }
 0x341   :  { %v2779_v47 = vrot.slane %v2778_v33, 1  ;;  %v2810_v42 = vadd.f32 %v2809_v34, %v2808_v22  ;;  %v2791_v50 = vrot.slane %v2790_v37, 1  ;;  %v2822_v49 = vadd.f32 %v2821_v46, %v2820_v24  ;;  %v2763_v22 = vld [vmem:[%s4693_s8] sm:$0xf] }
 0x342   :  { %v2793_v52 = vmul.f32 %v2774_v35, %v4569_v60  ;;  %v2806_v43 = vadd.f32 %v2805_v36, %v2804_v30  ;;  %v2795_v51 = vmul.f32 %v2786_v39, %v4569_v60  ;;  %v2818_v58 = vadd.f32 %v2817_v38, %v2816_v32 }
 0x343   :  { %v2780_v59 = vadd.f32 %v2779_v47, %v2778_v33  ;;  %v2811_v61 = vrot.slane %v2810_v42, 1  ;;  %v2792_v62 = vadd.f32 %v2791_v50, %v2790_v37  ;;  %v2823_v63 = vrot.slane %v2822_v49, 1 }
 0x344   :  { %v2825_v0 = vmul.f32 %v2806_v43, %v4569_v60  ;;  %v2829_v1 = vmul.f32 %v2793_v52, %v2793_v52  ;;  %v2827_v2 = vmul.f32 %v2818_v58, %v4569_v60  ;;  %v2831_v3 = vmul.f32 %v2795_v51, %v2795_v51 }
 0x345   :  { %v2794_v4 = vmul.f32 %v2780_v59, %v4569_v60  ;;  %v2812_v5 = vadd.f32 %v2811_v61, %v2810_v42  ;;  %v2796_v7 = vmul.f32 %v2792_v62, %v4569_v60  ;;  %v2824_v8 = vadd.f32 %v2823_v63, %v2822_v49 }
 0x346   :  { %v2833_v6 = vsub.f32 %v2825_v0, %v2829_v1  ;;  %v2835_v53 = vsub.f32 %v2827_v2, %v2831_v3  ;;  %v2861_v23 = vrot.slane %v2763_v22, %v4519_v25  ;;  %v2843_v27 = vsub.f32 %v2761_v55, %v2795_v51 }
 0x347   :  { %v2826_v9 = vmul.f32 %v2812_v5, %v4569_v60  ;;  %v2830_v10 = vmul.f32 %v2794_v4, %v2794_v4  ;;  %v2828_v12 = vmul.f32 %v2824_v8, %v4569_v60  ;;  %v2832_v13 = vmul.f32 %v2796_v7, %v2796_v7 }
 0x348   :  { %v2837_v11 = vmax.f32 %v2833_v6, 0.0  ;;  %v2839_v14 = vmax.f32 %v2835_v53, 0.0  ;;  %v2841_v60 = vsub.f32 %v2759_v54, %v2793_v52  ;;  %v2869_v30 = vrot.slane %v2763_v22, %v4521_v26 }
 0x349   :  { %v2834_v15 = vsub.f32 %v2826_v9, %v2830_v10  ;;  %v2836_v17 = vsub.f32 %v2828_v12, %v2832_v13  ;;  %v2842_v37 = vsub.f32 %v2760_v56, %v2794_v4  ;;  %v2865_v40 = vrot.slane %v2763_v22, %v4526_v28 }
 0x34a   :  { %v2845_v16 = vadd.f32 1e-05, %v2837_v11  ;;  %v2847_v18 = vadd.f32 1e-05, %v2839_v14  ;;  %v2844_v44 = vsub.f32 %v2762_v57, %v2796_v7  ;;  %v2873_v55 = vrot.slane %v2763_v22, %v4528_v29 }
 0x34b   :  { %v2838_v19 = vmax.f32 %v2834_v15, 0.0  ;;  %v2840_v41 = vmax.f32 %v2836_v17, 0.0  ;;  %v2886_v35 = vrot.slane %v2764_v31, %v4519_v25  ;;  %v2890_v47 = vrot.slane %v2764_v31, %v4526_v28 }
 0x34c   :  { %4259 = vrsqrt.f32 %v2845_v16  ;;  %v2894_v42 = vrot.slane %v2764_v31, %v4521_v26  ;;  %v2898_v56 = vrot.slane %v2764_v31, %v4528_v29  ;;  %v3602_v26 = vld [vmem:[%s4696_s11] ss:$0 sm:$0xff]  ;;  %s4357_s11 = scalar_lea.vmem %s3266_s29, 128 }
 0x34d   :  { %4261 = vrsqrt.f32 %v2847_v18  ;;  %v2846_v20 = vadd.f32 1e-05, %v2838_v19  ;;  %v2848_v21 = vadd.f32 1e-05, %v2840_v41  ;;  %p4358_p4 = scmp.ne.s32.totalorder %s3266_s29, %s4357_s11  ;;  %p4363_p6 = scmp.lt.s32.totalorder %s4357_s11, %s4357_s11 }
 0x34f   :  { %4263 = vrsqrt.f32 %v2846_v20  ;;  %p4364_p7 = por %p4363_p6, %p4362_p5 }
 0x350   :  { %4265 = vrsqrt.f32 %v2848_v21 }
 0x351   :  { %p4365_p8 = pnand %p4364_p7, %p4358_p4 }
 0x356   :  { %v4260_v24 = vpop.eup %4259 }
 0x357   :  { %v4262_v32 = vpop.eup %4261  ;;  %v2853_v33 = vmul.f32 %v4260_v24, %v2841_v60 }
 0x358   :  { %v2855_v34 = vmul.f32 %v4262_v32, %v2843_v27 }
 0x359   :  { %v4264_v54 = vpop.eup %4263  ;;  %v2878_v46 = vmul.f32 %v2861_v23, %v2853_v33 }
 0x35a   :  { %v4266_v36 = vpop.eup %4265  ;;  %v2880_v39 = vmul.f32 %v2869_v30, %v2855_v34  ;;  %v2854_v38 = vmul.f32 %v4264_v54, %v2842_v37 }
 0x35b   :  { %v2856_v45 = vmul.f32 %v4266_v36, %v2844_v44  ;;  %v2903_v52 = vadd.f32 %v2886_v35, %v2878_v46 }
 0x35c   :  { %v2879_v50 = vmul.f32 %v2865_v40, %v2854_v38  ;;  %v2905_v48 = vadd.f32 %v2894_v42, %v2880_v39 }
 0x35d   :  { %v2881_v49 = vmul.f32 %v2873_v55, %v2856_v45  ;;  %v2907_v59 = vpack.c.bf16 %v2903_v52, %v2903_v52 }
 0x35e   :  { %v2904_v43 = vadd.f32 %v2890_v47, %v2879_v50  ;;  %v2909_v25 = vpack.c.bf16 %v2905_v48, %v2905_v48 }
 0x35f   :  { %v2906_v57 = vadd.f32 %v2898_v56, %v2881_v49 }
 0x360   :  { %v2908_v51 = vpack.c.bf16 %v2904_v43, %v2904_v43 }
 0x361   :  { %v2910_v58 = vpack.c.bf16 %v2906_v57, %v2906_v57 }
 0x362   :  { %3206 = vmatprep.mubr.bf16.mxu0 %v2908_v51 }
 0x363   :  { %3246 = vmatprep.mubr.bf16.mxu1 %v2910_v58  ;;  %3207 = vmatmul.mubr.bf16.vlgmr.msra.gmra.mrb[8].mxu0 %v2907_v59 }
 0x364   :  { %3247 = vmatmul.mubr.bf16.vlgmr.msra.gmra.mrb[8].mxu1 %v2909_v25 }
 0x436   :  { %v3651_v28 = vpop.f32.mrb[8].mxu0 }
 0x437   :  { %v3673_v61 = vpop.f32.mrb[8].mxu1  ;;  %v3652_v29 = vpop.f32.mrb[9].mxu0 }
 0x438   :  { %v3653_v62 = vadd.f32 %v3652_v29, %v3651_v28  ;;  %v3674_v63 = vpop.f32.mrb[9].mxu1  ;;  %v3654_v0 = vpop.f32.mrb[10].mxu0 }
 0x439   :  { %v3675_v1 = vadd.f32 %v3674_v63, %v3673_v61  ;;  %v3676_v2 = vpop.f32.mrb[10].mxu1  ;;  %v3655_v3 = vpop.f32.mrb[11].mxu0 }
 0x43a   :  { %v3209_v4 = vadd.f32 %v3653_v62, %v3602_v26  ;;  %v3677_v5 = vpop.f32.mrb[11].mxu1 }
 0x43c   :  { %v3249_v6 = vadd.f32 %v3675_v1, %v3209_v4 }
 0x43e   :  { %v3254_v7 = vmul.f32 0.5, %v3249_v6 }
 0x440   :  { %4267 = vtanh.f32 %v3254_v7 }
 0x44a   :  { %v4268_v8 = vpop.eup %4267 }
 0x44b   :  { %v3256_v53 = vadd.f32 1.0, %v4268_v8 }
 0x44d   :  { %v3257_v9 = vmul.f32 0.5, %v3256_v53 }
 0x44f   :  { %3258 = vst [vmem:[#allocation11] sm:$0xff] %v3257_v9 }
 0x450   :  { %4368 = shalt.err (!%p4365_p8)
}
 0x451   :  { %s4369_s16 = scalar_lea.hbm %s4697_s12, 128 }
 0x452   :  { %p4370_p9 = scmp.ne.s32.totalorder %s4697_s12, %s4369_s16  ;;  %p4373_p10 = scmp.lt.u32.totalorder %s4369_s16, %s4697_s12 }
 0x454   :  { %p4375_p11 = pnand %p4373_p10, %p4370_p9 }
 0x456   :  { %4378 = shalt.err (!%p4375_p11)
}
 0x457   :  { %3268 = dma.vmem_to_hbm [thread:$0]  %s3266_s29, 128, %s4697_s12, [#allocation5]  }
 0x458   :  { %4385 = dma.done.wait [#allocation5], 128  }
 0x459   :  { %4386 = vsyncadd [#allocation5], 4294967168 }
 0x45a   :  { %3272 = vsyncpa [#allocation4], 1 }
 0x45b   :  { %3273 = vsyncpa [#allocation7], 1 }
 0x45c   :  { %3274 = vsyncpa [#allocation10], 1 }
 0x45d   :  { %3275 = vsyncpa [#allocation5], 1 }

</bundles_post_ra>
